<compile_context>
chip_gen: v6e
topology: v6e:2x2x1
jax: 0.10.0
libtpu: 0.0.40
codegen_flags: <defaults>
</compile_context>

<pallas_src>
import jax
import jax.numpy as jnp
from jax.experimental import pallas as pl
from jax.experimental.pallas import tpu as pltpu

# ---- model hyper-parameters (small, consistent with the module) ----
BATCH = 2
SEQ = 8                      # N (tokens)
DIM = 32                     # C (channels)
NUM_HEADS = 4
HEAD_DIM = DIM // NUM_HEADS  # 8
MLP_RATIO = 4.0
MLP_HIDDEN = int(DIM * MLP_RATIO)
EPS = 1e-5                   # PyTorch LayerNorm default eps
SCALE = HEAD_DIM ** -0.5
GROUPS = BATCH * NUM_HEADS   # fused (batch, head) batch dimension
INV_SQRT2 = 0.7071067811865476  # 1/sqrt(2) as a Python float


def _gelu_exact(x):
    # nn.GELU default = exact (erf) formulation
    return 0.5 * x * (1.0 + jax.lax.erf(x * INV_SQRT2))


def _layernorm(v, g, b):
    mu = jnp.mean(v, axis=-1, keepdims=True)
    var = jnp.mean(jnp.square(v - mu), axis=-1, keepdims=True)
    return (v - mu) * jax.lax.rsqrt(var + EPS) * g + b


def block_kernel(x_ref, vec_ref, wqkv_ref, wproj_ref, wmlp_ref, bfc1_ref, o_ref):
    """Whole ViT block in one invocation.

    x_ref    : (B*N, C)         tokens, batch folded into sublanes
    vec_ref  : (6, C)           rows = [ln1_g, ln1_b, ln2_g, ln2_b, proj_b, fc2_b]
    wqkv_ref : (3, B*H, C, hd)  per-(batch, head) q/k/v projection weights
    wproj_ref: (B*H, hd, C)     per-(batch, head) rows of the output projection
    wmlp_ref : (2, C, HID)      [fc1 (C, HID), fc2 stored as (C, HID) = W2^T]
    bfc1_ref : (1, HID)
    o_ref    : (B*N, C)
    """
    B, N, C, H, G = BATCH, SEQ, DIM, NUM_HEADS, GROUPS

    x = x_ref[...]                                         # (BN, C) f32

    g1 = vec_ref[0:1, :]
    b1 = vec_ref[1:2, :]
    g2 = vec_ref[2:3, :]
    b2 = vec_ref[3:4, :]
    bproj = vec_ref[4:5, :]
    bfc2 = vec_ref[5:6, :]

    # ---------------- LayerNorm 1 + multi-head attention ----------------
    xn = _layernorm(x, g1, b1)                             # (BN, C)

    # Broadcast normalized tokens over heads -> (B*H, N, C).  Only leading /
    # tile-aligned dims are touched; the minor (8, 32) tile is preserved.
    xn_g = jnp.broadcast_to(xn.reshape(B, 1, N, C), (B, H, N, C)).reshape(G, N, C)

    q = jnp.einsum('gnc,gcd->gnd', xn_g, wqkv_ref[0],
                   preferred_element_type=jnp.float32)     # (G, N, hd)
    k = jnp.einsum('gnc,gcd->gnd', xn_g, wqkv_ref[1],
                   preferred_element_type=jnp.float32)
    v = jnp.einsum('gnc,gcd->gnd', xn_g, wqkv_ref[2],
                   preferred_element_type=jnp.float32)

    s = jnp.einsum('gqd,gkd->gqk', q, k,
                   preferred_element_type=jnp.float32) * SCALE   # (G, N, N)
    s = s - jnp.max(s, axis=-1, keepdims=True)
    p = jnp.exp(s)
    p = p * pl.reciprocal(jnp.sum(p, axis=-1, keepdims=True), approx=True)

    ctx = jnp.einsum('gqk,gkd->gqd', p, v,
                     preferred_element_type=jnp.float32)   # (G, N, hd)

    # Per-(batch, head) slice of the output projection, then reduce over heads.
    proj = jnp.einsum('gnd,gdc->gnc', ctx, wproj_ref[...],
                      preferred_element_type=jnp.float32)  # (G, N, C)
    attn_out = jnp.sum(proj.reshape(B, H, N, C), axis=1).reshape(B * N, C) + bproj

    x1 = x + attn_out                                      # residual 1

    # ---------------- LayerNorm 2 + MLP ----------------
    xn2 = _layernorm(x1, g2, b2)
    h = jnp.dot(xn2, wmlp_ref[0],
                preferred_element_type=jnp.float32) + bfc1_ref[...]   # (BN, HID)
    h = _gelu_exact(h)
    # fc2 packed as (C, HID): contract over HID ("trans_b" MXU pattern).
    mlp_out = jnp.einsum('mh,ch->mc', h, wmlp_ref[1],
                         preferred_element_type=jnp.float32) + bfc2   # (BN, C)

    o_ref[...] = (x1 + mlp_out).astype(o_ref.dtype)        # residual 2


def vit_block(x, params):
    """x: (B, N, C) float32; params in torch-equivalent (in, out) layouts."""
    g1, b1, wqkv, wproj, bproj, g2, b2, wfc1, bfc1, wfc2, bfc2 = params
    B, N, C = x.shape
    H, hd = NUM_HEADS, C // NUM_HEADS
    G = B * H

    # ---- wrapper-side (free, plain XLA) parameter re-layout ----
    def per_head_in(w):   # (C, C): head h uses output columns [h*hd, (h+1)*hd)
        return w.reshape(C, H, hd).transpose(1, 0, 2)          # (H, C, hd)

    wq, wk, wv = wqkv[:, :C], wqkv[:, C:2 * C], wqkv[:, 2 * C:]
    wqkv_h = jnp.stack([per_head_in(wq), per_head_in(wk), per_head_in(wv)])
    wqkv_g = jnp.broadcast_to(wqkv_h[:, None], (3, B, H, C, hd)).reshape(3, G, C, hd)

    wproj_h = wproj.reshape(H, hd, C)                          # rows per head
    wproj_g = jnp.broadcast_to(wproj_h[None], (B, H, hd, C)).reshape(G, hd, C)

    vecs = jnp.concatenate([g1, b1, g2, b2, bproj, bfc2], axis=0)   # (6, C)
    wmlp = jnp.stack([wfc1, wfc2.T])                                # (2, C, HID)

    x2d = x.reshape(B * N, C)

    vmem = pl.BlockSpec(memory_space=pltpu.MemorySpace.VMEM)
    out2d = pl.pallas_call(
        block_kernel,
        out_shape=jax.ShapeDtypeStruct((B * N, C), x.dtype),
        in_specs=[vmem, vmem, vmem, vmem, vmem, vmem],
        out_specs=vmem,
    )(x2d, vecs, wqkv_g, wproj_g, wmlp, bfc1)

    return out2d.reshape(B, N, C)


# ---------------- pure-JAX reference (torch semantics) ----------------
def vit_block_ref(x, params):
    g1, b1, wqkv, wproj, bproj, g2, b2, wfc1, bfc1, wfc2, bfc2 = params
    B, N, C = x.shape
    H, hd = NUM_HEADS, C // NUM_HEADS

    def ln(v, g, b):
        mu = jnp.mean(v, axis=-1, keepdims=True)
        var = jnp.mean((v - mu) ** 2, axis=-1, keepdims=True)
        return (v - mu) / jnp.sqrt(var + EPS) * g + b

    xn = ln(x, g1, b1)
    qkv = xn @ wqkv                                           # (B, N, 3C)
    qkv = qkv.reshape(B, N, 3, H, hd).transpose(2, 0, 3, 1, 4)
    q, k, v = qkv[0], qkv[1], qkv[2]                          # (B, H, N, hd)
    attn = jnp.einsum('bhqd,bhkd->bhqk', q, k) * (hd ** -0.5)
    attn = jax.nn.softmax(attn, axis=-1)
    ctx = jnp.einsum('bhqk,bhkd->bhqd', attn, v).transpose(0, 2, 1, 3).reshape(B, N, C)
    x1 = x + (ctx @ wproj + bproj)

    xn2 = ln(x1, g2, b2)
    h = jax.nn.gelu(xn2 @ wfc1 + bfc1, approximate=False)
    return x1 + (h @ wfc2 + bfc2)


def make_params(key):
    ks = jax.random.split(key, 8)
    s = 0.05
    # weights stored pre-transposed (in_features, out_features) for x @ W
    wqkv = jax.random.normal(ks[0], (DIM, 3 * DIM), jnp.float32) * s   # qkv_bias=False
    wproj = jax.random.normal(ks[1], (DIM, DIM), jnp.float32) * s
    bproj = jax.random.normal(ks[2], (1, DIM), jnp.float32) * s
    wfc1 = jax.random.normal(ks[3], (DIM, MLP_HIDDEN), jnp.float32) * s
    bfc1 = jax.random.normal(ks[4], (1, MLP_HIDDEN), jnp.float32) * s
    wfc2 = jax.random.normal(ks[5], (MLP_HIDDEN, DIM), jnp.float32) * s
    bfc2 = jax.random.normal(ks[6], (1, DIM), jnp.float32) * s
    g1 = jnp.ones((1, DIM), jnp.float32)
    b1 = jnp.zeros((1, DIM), jnp.float32)
    g2 = jnp.ones((1, DIM), jnp.float32)
    b2 = jnp.zeros((1, DIM), jnp.float32)
    return (g1, b1, wqkv, wproj, bproj, g2, b2, wfc1, bfc1, wfc2, bfc2)


if __name__ == "__main__":
    key = jax.random.PRNGKey(0)
    kx, kp = jax.random.split(key)
    x = jax.random.normal(kx, (BATCH, SEQ, DIM), jnp.float32)
    params = make_params(kp)

    out = vit_block(x, params)
    out = jax.block_until_ready(out)

    ref = vit_block_ref(x, params)
    assert out.shape == (BATCH, SEQ, DIM)
    err = float(jnp.max(jnp.abs(out - ref)))
    # 1e-3 tolerance: the softmax denominator uses the EUP approx reciprocal.
    assert jnp.allclose(out, ref, atol=1e-3, rtol=1e-3), err
    print("KERNEL_OK")
</pallas_src>

<mosaic_0001>
module attributes {stable_mosaic.version = 11 : i64} {
  func.func @block_kernel(%arg0: memref<16x32xf32, #tpu.memory_space<vmem>>, %arg1: memref<6x32xf32, #tpu.memory_space<vmem>>, %arg2: memref<3x8x32x8xf32, #tpu.memory_space<vmem>>, %arg3: memref<8x8x32xf32, #tpu.memory_space<vmem>>, %arg4: memref<2x32x128xf32, #tpu.memory_space<vmem>>, %arg5: memref<1x128xf32, #tpu.memory_space<vmem>>, %arg6: memref<16x32xf32, #tpu.memory_space<vmem>>) attributes {dimension_semantics = [], scalar_prefetch = 0 : i64, scratch_operands = 0 : i64, tpu.core_type = #tpu.core_type<tc>} {
    %c0 = arith.constant 0 : index
    %c0_0 = arith.constant 0 : index
    %0 = vector.load %arg0[%c0, %c0_0] : memref<16x32xf32, #tpu.memory_space<vmem>>, vector<16x32xf32>
    %c0_1 = arith.constant 0 : index
    %c0_2 = arith.constant 0 : index
    %1 = vector.load %arg1[%c0_1, %c0_2] : memref<6x32xf32, #tpu.memory_space<vmem>>, vector<1x32xf32>
    %c1 = arith.constant 1 : index
    %c0_3 = arith.constant 0 : index
    %2 = vector.load %arg1[%c1, %c0_3] : memref<6x32xf32, #tpu.memory_space<vmem>>, vector<1x32xf32>
    %c2 = arith.constant 2 : index
    %c0_4 = arith.constant 0 : index
    %3 = vector.load %arg1[%c2, %c0_4] : memref<6x32xf32, #tpu.memory_space<vmem>>, vector<1x32xf32>
    %c3 = arith.constant 3 : index
    %c0_5 = arith.constant 0 : index
    %4 = vector.load %arg1[%c3, %c0_5] : memref<6x32xf32, #tpu.memory_space<vmem>>, vector<1x32xf32>
    %c4 = arith.constant 4 : index
    %c0_6 = arith.constant 0 : index
    %5 = vector.load %arg1[%c4, %c0_6] : memref<6x32xf32, #tpu.memory_space<vmem>>, vector<1x32xf32>
    %c5 = arith.constant 5 : index
    %c0_7 = arith.constant 0 : index
    %6 = vector.load %arg1[%c5, %c0_7] : memref<6x32xf32, #tpu.memory_space<vmem>>, vector<1x32xf32>
    %cst = arith.constant dense<0.000000e+00> : vector<16xf32>
    %7 = vector.multi_reduction <add>, %0, %cst [1] : vector<16x32xf32> to vector<16xf32>
    %8 = vector.shape_cast %7 : vector<16xf32> to vector<16x1xf32>
    %cst_8 = arith.constant 3.200000e+01 : f32
    %9 = vector.broadcast %cst_8 : f32 to vector<16x1xf32>
    %10 = arith.divf %8, %9 : vector<16x1xf32>
    %11 = vector.broadcast %10 : vector<16x1xf32> to vector<16x32xf32>
    %12 = arith.subf %0, %11 : vector<16x32xf32>
    %13 = arith.mulf %12, %12 : vector<16x32xf32>
    %cst_9 = arith.constant dense<0.000000e+00> : vector<16xf32>
    %14 = vector.multi_reduction <add>, %13, %cst_9 [1] : vector<16x32xf32> to vector<16xf32>
    %15 = vector.shape_cast %14 : vector<16xf32> to vector<16x1xf32>
    %cst_10 = arith.constant 3.200000e+01 : f32
    %16 = vector.broadcast %cst_10 : f32 to vector<16x1xf32>
    %17 = arith.divf %15, %16 : vector<16x1xf32>
    %18 = vector.broadcast %10 : vector<16x1xf32> to vector<16x32xf32>
    %19 = arith.subf %0, %18 : vector<16x32xf32>
    %cst_11 = arith.constant 9.99999974E-6 : f32
    %20 = vector.broadcast %cst_11 : f32 to vector<16x1xf32>
    %21 = arith.addf %17, %20 : vector<16x1xf32>
    %22 = math.rsqrt %21 : vector<16x1xf32>
    %23 = vector.broadcast %22 : vector<16x1xf32> to vector<16x32xf32>
    %24 = arith.mulf %19, %23 : vector<16x32xf32>
    %25 = vector.broadcast %1 : vector<1x32xf32> to vector<16x32xf32>
    %26 = arith.mulf %24, %25 : vector<16x32xf32>
    %27 = vector.broadcast %2 : vector<1x32xf32> to vector<16x32xf32>
    %28 = arith.addf %26, %27 : vector<16x32xf32>
    %29 = vector.shape_cast %28 : vector<16x32xf32> to vector<2x1x8x32xf32>
    %30 = vector.shape_cast %29 : vector<2x1x8x32xf32> to vector<2x1x8x32xf32>
    %31 = vector.broadcast %30 : vector<2x1x8x32xf32> to vector<2x4x8x32xf32>
    %32 = vector.shape_cast %31 : vector<2x4x8x32xf32> to vector<8x8x32xf32>
    %c0_12 = arith.constant 0 : index
    %c0_13 = arith.constant 0 : index
    %c0_14 = arith.constant 0 : index
    %c0_15 = arith.constant 0 : index
    %33 = vector.load %arg2[%c0_12, %c0_13, %c0_14, %c0_15] : memref<3x8x32x8xf32, #tpu.memory_space<vmem>>, vector<1x8x32x8xf32>
    %34 = vector.shape_cast %33 : vector<1x8x32x8xf32> to vector<8x32x8xf32>
    "tpu.trace_start"() <{level = 10 : i32, message = "gnc,gcd->gnd"}> : () -> ()
    %cst_16 = arith.constant dense<0.000000e+00> : vector<8x8x8xf32>
    %35 = tpu.matmul %32, %34, %cst_16 {dimension_numbers = #tpu.dot_dimension_numbers<[2], [1], [1], [2], [0, 0, 0, 1, 1, 2], [0], [0]>} : vector<8x8x32xf32>, vector<8x32x8xf32>, vector<8x8x8xf32> -> vector<8x8x8xf32>
    "tpu.trace_stop"() : () -> ()
    %c1_17 = arith.constant 1 : index
    %c0_18 = arith.constant 0 : index
    %c0_19 = arith.constant 0 : index
    %c0_20 = arith.constant 0 : index
    %36 = vector.load %arg2[%c1_17, %c0_18, %c0_19, %c0_20] : memref<3x8x32x8xf32, #tpu.memory_space<vmem>>, vector<1x8x32x8xf32>
    %37 = vector.shape_cast %36 : vector<1x8x32x8xf32> to vector<8x32x8xf32>
    "tpu.trace_start"() <{level = 10 : i32, message = "gnc,gcd->gnd"}> : () -> ()
    %cst_21 = arith.constant dense<0.000000e+00> : vector<8x8x8xf32>
    %38 = tpu.matmul %32, %37, %cst_21 {dimension_numbers = #tpu.dot_dimension_numbers<[2], [1], [1], [2], [0, 0, 0, 1, 1, 2], [0], [0]>} : vector<8x8x32xf32>, vector<8x32x8xf32>, vector<8x8x8xf32> -> vector<8x8x8xf32>
    "tpu.trace_stop"() : () -> ()
    %c2_22 = arith.constant 2 : index
    %c0_23 = arith.constant 0 : index
    %c0_24 = arith.constant 0 : index
    %c0_25 = arith.constant 0 : index
    %39 = vector.load %arg2[%c2_22, %c0_23, %c0_24, %c0_25] : memref<3x8x32x8xf32, #tpu.memory_space<vmem>>, vector<1x8x32x8xf32>
    %40 = vector.shape_cast %39 : vector<1x8x32x8xf32> to vector<8x32x8xf32>
    "tpu.trace_start"() <{level = 10 : i32, message = "gnc,gcd->gnd"}> : () -> ()
    %cst_26 = arith.constant dense<0.000000e+00> : vector<8x8x8xf32>
    %41 = tpu.matmul %32, %40, %cst_26 {dimension_numbers = #tpu.dot_dimension_numbers<[2], [1], [1], [2], [0, 0, 0, 1, 1, 2], [0], [0]>} : vector<8x8x32xf32>, vector<8x32x8xf32>, vector<8x8x8xf32> -> vector<8x8x8xf32>
    "tpu.trace_stop"() : () -> ()
    "tpu.trace_start"() <{level = 10 : i32, message = "gqd,gkd->gqk"}> : () -> ()
    %cst_27 = arith.constant dense<0.000000e+00> : vector<8x8x8xf32>
    %42 = tpu.matmul %35, %38, %cst_27 {dimension_numbers = #tpu.dot_dimension_numbers<[2], [2], [1], [1], [0, 0, 0, 1, 1, 1], [0], [0]>} : vector<8x8x8xf32>, vector<8x8x8xf32>, vector<8x8x8xf32> -> vector<8x8x8xf32>
    "tpu.trace_stop"() : () -> ()
    %cst_28 = arith.constant 0.353553385 : f32
    %43 = vector.broadcast %cst_28 : f32 to vector<8x8x8xf32>
    %44 = arith.mulf %42, %43 : vector<8x8x8xf32>
    %cst_29 = arith.constant dense<0xFF800000> : vector<8x8xf32>
    %45 = vector.multi_reduction <maximumf>, %44, %cst_29 [2] : vector<8x8x8xf32> to vector<8x8xf32>
    %46 = vector.shape_cast %45 : vector<8x8xf32> to vector<8x8x1xf32>
    %47 = vector.broadcast %46 : vector<8x8x1xf32> to vector<8x8x8xf32>
    %48 = arith.subf %44, %47 : vector<8x8x8xf32>
    %49 = math.exp %48 : vector<8x8x8xf32>
    %cst_30 = arith.constant dense<0.000000e+00> : vector<8x8xf32>
    %50 = vector.multi_reduction <add>, %49, %cst_30 [2] : vector<8x8x8xf32> to vector<8x8xf32>
    %51 = vector.shape_cast %50 : vector<8x8xf32> to vector<8x8x1xf32>
    %52 = tpu.reciprocal %51 {approx = true} : vector<8x8x1xf32> -> vector<8x8x1xf32>
    %53 = vector.broadcast %52 : vector<8x8x1xf32> to vector<8x8x8xf32>
    %54 = arith.mulf %49, %53 : vector<8x8x8xf32>
    "tpu.trace_start"() <{level = 10 : i32, message = "gqk,gkd->gqd"}> : () -> ()
    %cst_31 = arith.constant dense<0.000000e+00> : vector<8x8x8xf32>
    %55 = tpu.matmul %54, %41, %cst_31 {dimension_numbers = #tpu.dot_dimension_numbers<[2], [1], [1], [2], [0, 0, 0, 1, 1, 2], [0], [0]>} : vector<8x8x8xf32>, vector<8x8x8xf32>, vector<8x8x8xf32> -> vector<8x8x8xf32>
    "tpu.trace_stop"() : () -> ()
    %c0_32 = arith.constant 0 : index
    %c0_33 = arith.constant 0 : index
    %c0_34 = arith.constant 0 : index
    %56 = vector.load %arg3[%c0_32, %c0_33, %c0_34] : memref<8x8x32xf32, #tpu.memory_space<vmem>>, vector<8x8x32xf32>
    "tpu.trace_start"() <{level = 10 : i32, message = "gnd,gdc->gnc"}> : () -> ()
    %cst_35 = arith.constant dense<0.000000e+00> : vector<8x8x32xf32>
    %57 = tpu.matmul %55, %56, %cst_35 {dimension_numbers = #tpu.dot_dimension_numbers<[2], [1], [1], [2], [0, 0, 0, 1, 1, 2], [0], [0]>} : vector<8x8x8xf32>, vector<8x8x32xf32>, vector<8x8x32xf32> -> vector<8x8x32xf32>
    "tpu.trace_stop"() : () -> ()
    %58 = vector.shape_cast %57 : vector<8x8x32xf32> to vector<2x4x8x32xf32>
    %cst_36 = arith.constant dense<0.000000e+00> : vector<2x8x32xf32>
    %59 = vector.multi_reduction <add>, %58, %cst_36 [1] : vector<2x4x8x32xf32> to vector<2x8x32xf32>
    %60 = vector.shape_cast %59 : vector<2x8x32xf32> to vector<16x32xf32>
    %61 = vector.broadcast %5 : vector<1x32xf32> to vector<16x32xf32>
    %62 = arith.addf %60, %61 : vector<16x32xf32>
    %63 = arith.addf %0, %62 : vector<16x32xf32>
    %cst_37 = arith.constant dense<0.000000e+00> : vector<16xf32>
    %64 = vector.multi_reduction <add>, %63, %cst_37 [1] : vector<16x32xf32> to vector<16xf32>
    %65 = vector.shape_cast %64 : vector<16xf32> to vector<16x1xf32>
    %cst_38 = arith.constant 3.200000e+01 : f32
    %66 = vector.broadcast %cst_38 : f32 to vector<16x1xf32>
    %67 = arith.divf %65, %66 : vector<16x1xf32>
    %68 = vector.broadcast %67 : vector<16x1xf32> to vector<16x32xf32>
    %69 = arith.subf %63, %68 : vector<16x32xf32>
    %70 = arith.mulf %69, %69 : vector<16x32xf32>
    %cst_39 = arith.constant dense<0.000000e+00> : vector<16xf32>
    %71 = vector.multi_reduction <add>, %70, %cst_39 [1] : vector<16x32xf32> to vector<16xf32>
    %72 = vector.shape_cast %71 : vector<16xf32> to vector<16x1xf32>
    %cst_40 = arith.constant 3.200000e+01 : f32
    %73 = vector.broadcast %cst_40 : f32 to vector<16x1xf32>
    %74 = arith.divf %72, %73 : vector<16x1xf32>
    %75 = vector.broadcast %67 : vector<16x1xf32> to vector<16x32xf32>
    %76 = arith.subf %63, %75 : vector<16x32xf32>
    %cst_41 = arith.constant 9.99999974E-6 : f32
    %77 = vector.broadcast %cst_41 : f32 to vector<16x1xf32>
    %78 = arith.addf %74, %77 : vector<16x1xf32>
    %79 = math.rsqrt %78 : vector<16x1xf32>
    %80 = vector.broadcast %79 : vector<16x1xf32> to vector<16x32xf32>
    %81 = arith.mulf %76, %80 : vector<16x32xf32>
    %82 = vector.broadcast %3 : vector<1x32xf32> to vector<16x32xf32>
    %83 = arith.mulf %81, %82 : vector<16x32xf32>
    %84 = vector.broadcast %4 : vector<1x32xf32> to vector<16x32xf32>
    %85 = arith.addf %83, %84 : vector<16x32xf32>
    %c0_42 = arith.constant 0 : index
    %c0_43 = arith.constant 0 : index
    %c0_44 = arith.constant 0 : index
    %86 = vector.load %arg4[%c0_42, %c0_43, %c0_44] : memref<2x32x128xf32, #tpu.memory_space<vmem>>, vector<1x32x128xf32>
    %87 = vector.shape_cast %86 : vector<1x32x128xf32> to vector<32x128xf32>
    %cst_45 = arith.constant dense<0.000000e+00> : vector<16x128xf32>
    %88 = tpu.matmul %85, %87, %cst_45 {dimension_numbers = #tpu.dot_dimension_numbers<[1], [0], [0], [1], [0, 0, 1, 1], [], []>} : vector<16x32xf32>, vector<32x128xf32>, vector<16x128xf32> -> vector<16x128xf32>
    %c0_46 = arith.constant 0 : index
    %c0_47 = arith.constant 0 : index
    %89 = vector.load %arg5[%c0_46, %c0_47] : memref<1x128xf32, #tpu.memory_space<vmem>>, vector<1x128xf32>
    %90 = vector.broadcast %89 : vector<1x128xf32> to vector<16x128xf32>
    %91 = arith.addf %88, %90 : vector<16x128xf32>
    %cst_48 = arith.constant 5.000000e-01 : f32
    %92 = vector.broadcast %cst_48 : f32 to vector<16x128xf32>
    %93 = arith.mulf %92, %91 : vector<16x128xf32>
    %cst_49 = arith.constant 0.707106769 : f32
    %94 = vector.broadcast %cst_49 : f32 to vector<16x128xf32>
    %95 = arith.mulf %91, %94 : vector<16x128xf32>
    %96 = math.erf %95 : vector<16x128xf32>
    %cst_50 = arith.constant 1.000000e+00 : f32
    %97 = vector.broadcast %cst_50 : f32 to vector<16x128xf32>
    %98 = arith.addf %97, %96 : vector<16x128xf32>
    %99 = arith.mulf %93, %98 : vector<16x128xf32>
    %c1_51 = arith.constant 1 : index
    %c0_52 = arith.constant 0 : index
    %c0_53 = arith.constant 0 : index
    %100 = vector.load %arg4[%c1_51, %c0_52, %c0_53] : memref<2x32x128xf32, #tpu.memory_space<vmem>>, vector<1x32x128xf32>
    %101 = vector.shape_cast %100 : vector<1x32x128xf32> to vector<32x128xf32>
    "tpu.trace_start"() <{level = 10 : i32, message = "mh,ch->mc"}> : () -> ()
    %cst_54 = arith.constant dense<0.000000e+00> : vector<16x32xf32>
    %102 = tpu.matmul %99, %101, %cst_54 {dimension_numbers = #tpu.dot_dimension_numbers<[1], [1], [0], [0], [0, 0, 1, 0], [], []>} : vector<16x128xf32>, vector<32x128xf32>, vector<16x32xf32> -> vector<16x32xf32>
    "tpu.trace_stop"() : () -> ()
    %103 = vector.broadcast %6 : vector<1x32xf32> to vector<16x32xf32>
    %104 = arith.addf %102, %103 : vector<16x32xf32>
    %105 = arith.addf %63, %104 : vector<16x32xf32>
    %c0_55 = arith.constant 0 : index
    %c0_56 = arith.constant 0 : index
    %106 = vector.load %arg6[%c0_55, %c0_56] : memref<16x32xf32, #tpu.memory_space<vmem>>, vector<16x32xf32>
    tpu.vector_store %arg6[%c0_55, %c0_56], %105 {strides = array<i32>} : memref<16x32xf32, #tpu.memory_space<vmem>>, vector<16x32xf32>,
    return
  }
}

</mosaic_0001>

<bundles_post_ra>
// kernel: tpu_custom_call.1
= control target key start
LH: loop header
LB: loop body
LE: loop exit
PB: predicated region body
PF: predicated region fallthrough
CT: control target
= control target key end

     0   :  { %vm32_vm0 = vcmask 261120   ;;  %s5576_s0 = inlined_call_operand.vmem [shape: f32[16,32], index: 0, kind: input, shape index: {}]   ;;  %s5577_s1 = inlined_call_operand.vmem [shape: f32[6,32], index: 1, kind: input, shape index: {}]   ;;  %s5578_s2 = inlined_call_operand.vmem [shape: f32[3,8,32,8], index: 2, kind: input, shape index: {}]   ;;  %s5579_s3 = inlined_call_operand.vmem [shape: f32[8,8,32], index: 3, kind: input, shape index: {}]   ;;  %s5580_s4 = inlined_call_operand.vmem [shape: f32[2,32,128], index: 4, kind: input, shape index: {}]   ;;  %s5581_s5 = inlined_call_operand.vmem [shape: f32[1,128], index: 5, kind: input, shape index: {}]   ;;  %s5582_s6 = inlined_call_operand.hbm [shape: f32[16,32], index: 6, kind: output, shape index: {}]  }
   0x1   :  { %v24_v0 = vld [vmem:[%s5576_s0] sm:$0xff]  ;;  %v25_v1 = vld [vmem:[%s5576_s0 + $0x8] sm:$0xff] }
   0x2   :  { %11 = vsyncpa [#allocation3], 0  ;;  %v33_v2 = vsel %vm32_vm0, %v24_v0, 0.0  ;;  %v36_v3 = vsel %vm32_vm0, %v25_v1, 0.0  ;;  %v4795_v14 = vmov 0.0   ;;  %v75_v15 = vld [vmem:[%s5578_s2 + $0x18] sm:$0xff] }
   0x3   :  { %34 = vadd.xlane.f32.xlu0 %v33_v2  ;;  %4316 = vmatprep.subr.mxu0 %v4795_v14  ;;  %v79_v16 = vld [vmem:[%s5578_s2 + $0x38] sm:$0xff]  ;;  %v74_v17 = vld [vmem:[%s5578_s2 + $0x10] sm:$0xff]  ;;  %v73_v19 = vld [vmem:[%s5578_s2 + $0x8] sm:$0xff]  ;;  %vm4796_vm1 = vmmov 0   ;;  %vm1856_vm2 = vcmask 64512   ;;  %s4797_s20 = smov [#allocation2]  }
   0x4   :  { %4327 = vmatprep.subr.mxu1 %v4795_v14  ;;  %4317 = vmatpush3.msra.mxu0 %v75_v15  ;;  %v78_v18 = vld [vmem:[%s5578_s2 + $0x30] sm:$0xff]  ;;  %v77_v20 = vld [vmem:[%s5578_s2 + $0x28] sm:$0xff]  ;;  %v72_v21 = vld [vmem:[%s5578_s2] sm:$0xff]  ;;  %s3992_s21 = sshll.u32 %s4797_s20, 4  ;;  %s3993_s21 = int_to_ptr.vmem [resolvable:$true] %s3992_s21 }
   0x5   :  { %4328 = vmatpush3.msra.mxu1 %v79_v16  ;;  %4318 = vmatprep.subr.mxu0 %v4795_v14  ;;  %v76_v22 = vld [vmem:[%s5578_s2 + $0x20] sm:$0xff]  ;;  %v83_v35 = vld [vmem:[%s5578_s2 + $0x58] sm:$0xff]  ;;  %v82_v37 = vld [vmem:[%s5578_s2 + $0x50] sm:$0xff]  ;;  %s4773_s22 = scalar_lea.vmem %s3993_s21, 256  ;;  %p4778_p1 = scmp.lt.s32.totalorder %s3993_s21, %s3993_s21 }
   0x6   :  { %4329 = vmatprep.subr.mxu1 %v4795_v14  ;;  %4319 = vmatpush3.msra.mxu0 %v74_v17  ;;  %v4003_v30 = vld [vmem:[%s5577_s1] ss:$0 sm:$0xff]  ;;  %v4004_v32 = vld [vmem:[%s5577_s1 + $0x1] ss:$0 sm:$0xff]  ;;  %v87_v36 = vld [vmem:[%s5578_s2 + $0x78] sm:$0xff]  ;;  %p4774_p0 = scmp.ne.s32.totalorder %s3993_s21, %s4773_s22  ;;  %p4779_p2 = scmp.lt.s32.totalorder %s4773_s22, %s4773_s22 }
   0x7   :  { %37 = vadd.xlane.f32.xlu0 %v36_v3  ;;  %4330 = vmatpush3.msra.mxu1 %v78_v18  ;;  %v86_v38 = vld [vmem:[%s5578_s2 + $0x70] sm:$0xff]  ;;  %v81_v39 = vld [vmem:[%s5578_s2 + $0x48] sm:$0xff]  ;;  %v80_v41 = vld [vmem:[%s5578_s2 + $0x40] sm:$0xff] }
   0x8   :  { %4320 = vmatprep.subr.mxu0 %v4795_v14  ;;  %4331 = vmatprep.subr.mxu1 %v4795_v14  ;;  %v85_v40 = vld [vmem:[%s5578_s2 + $0x68] sm:$0xff]  ;;  %v84_v42 = vld [vmem:[%s5578_s2 + $0x60] sm:$0xff]  ;;  %v91_v44 = vld [vmem:[%s5578_s2 + $0x98] sm:$0xff]  ;;  %p4780_p3 = por %p4779_p2, %p4778_p1 }
   0x9   :  { %4321 = vmatpush3.msra.mxu0 %v73_v19  ;;  %4332 = vmatpush3.msra.mxu1 %v77_v20  ;;  %v95_v45 = vld [vmem:[%s5578_s2 + $0xb8] sm:$0xff]  ;;  %v90_v47 = vld [vmem:[%s5578_s2 + $0x90] sm:$0xff]  ;;  %v89_v49 = vld [vmem:[%s5578_s2 + $0x88] sm:$0xff] }
   0xa   :  { %4322 = vmatprep.subr.mxu0 %v4795_v14  ;;  %4333 = vmatprep.subr.mxu1 %v4795_v14  ;;  %v94_v48 = vld [vmem:[%s5578_s2 + $0xb0] sm:$0xff]  ;;  %v93_v50 = vld [vmem:[%s5578_s2 + $0xa8] sm:$0xff]  ;;  %v88_v52 = vld [vmem:[%s5578_s2 + $0x80] sm:$0xff]  ;;  %p4781_p4 = pnand %p4780_p3, %p4774_p0 }
   0xb   :  { %4323 = vmatpush3.msra.mxu0 %v72_v21  ;;  %4334 = vmatpush3.msra.mxu1 %v76_v22  ;;  %v92_v53 = vld [vmem:[%s5578_s2 + $0xa0] sm:$0xff]  ;;  %v99_v55 = vld [vmem:[%s5578_s2 + $0xd8] sm:$0xff]  ;;  %v98_v57 = vld [vmem:[%s5578_s2 + $0xd0] sm:$0xff] }
   0xc   :  { %4324 = vmatprep.mubr.msk.f32.mxu0 %vm4796_vm1, %v4795_v14  ;;  %4335 = vmatprep.mubr.msk.f32.mxu1 %vm4796_vm1, %v4795_v14  ;;  %v103_v56 = vld [vmem:[%s5578_s2 + $0xf8] sm:$0xff]  ;;  %v102_v58 = vld [vmem:[%s5578_s2 + $0xf0] sm:$0xff]  ;;  %v97_v59 = vld [vmem:[%s5578_s2 + $0xc8] sm:$0xff] }
   0xd   :  { %4338 = vmatprep.subr.mxu0 %v4795_v14  ;;  %4349 = vmatprep.subr.mxu1 %v4795_v14  ;;  %v101_v60 = vld [vmem:[%s5578_s2 + $0xe8] sm:$0xff]  ;;  %v96_v61 = vld [vmem:[%s5578_s2 + $0xc0] sm:$0xff]  ;;  %v4016_v63 = vld [vmem:[%s5578_s2 + $0x118] sm:$0xff] }
   0xe   :  { %v100_v62 = vld [vmem:[%s5578_s2 + $0xe0] sm:$0xff]  ;;  %v4019_v2 = vld [vmem:[%s5578_s2 + $0x130] sm:$0xff]  ;;  %v4014_v3 = vld [vmem:[%s5578_s2 + $0x108] sm:$0xff] }
   0xf   :  { %v4025_v15 = vld [vmem:[%s5578_s2 + $0x160] sm:$0xff]  ;;  %v4032_v16 = vld [vmem:[%s5578_s2 + $0x198] sm:$0xff]  ;;  %v4031_v18 = vld [vmem:[%s5578_s2 + $0x190] sm:$0xff] }
  0x10   :  { %v4036_v17 = vld [vmem:[%s5578_s2 + $0x1b8] sm:$0xff]  ;;  %v4035_v19 = vld [vmem:[%s5578_s2 + $0x1b0] sm:$0xff]  ;;  %v4030_v20 = vld [vmem:[%s5578_s2 + $0x188] sm:$0xff] }
  0x11   :  { %v4034_v21 = vld [vmem:[%s5578_s2 + $0x1a8] sm:$0xff]  ;;  %v4029_v22 = vld [vmem:[%s5578_s2 + $0x180] sm:$0xff] }
  0x8c   :  { %v35_v4 = vpop.xlane.xlu0 %34 }
  0x8d   :  { %v40_v5 = vmul.f32 0.03125, %v35_v4  ;;  %v4018_v4 = vld [vmem:[%s5578_s2 + $0x128] sm:$0xff] }
  0x8f   :  { %v42_v6 = vsub.f32 %v24_v0, %v40_v5  ;;  %v4020_v0 = vld [vmem:[%s5578_s2 + $0x138] sm:$0xff]  ;;  %v4013_v5 = vld [vmem:[%s5578_s2 + $0x100] sm:$0xff] }
  0x90   :  { %v38_v7 = vpop.xlane.xlu0 %37 }
  0x91   :  { %v41_v8 = vmul.f32 0.03125, %v38_v7  ;;  %v44_v9 = vmul.f32 %v42_v6, %v42_v6  ;;  %v4024_v7 = vld [vmem:[%s5578_s2 + $0x158] sm:$0xff] }
  0x93   :  { %v4843_v10 = vsub.f32 %v25_v1, %v41_v8  ;;  %v46_v11 = vsel %vm32_vm0, %v44_v9, 0.0  ;;  %v4015_v1 = vld [vmem:[%s5578_s2 + $0x110] sm:$0xff]  ;;  %v4028_v8 = vld [vmem:[%s5578_s2 + $0x178] sm:$0xff] }
  0x94   :  { %47 = vadd.xlane.f32.xlu1 %v46_v11  ;;  %v4023_v9 = vld [vmem:[%s5578_s2 + $0x150] sm:$0xff]  ;;  %v4022_v11 = vld [vmem:[%s5578_s2 + $0x148] sm:$0xff] }
  0x95   :  { %v45_v12 = vmul.f32 %v4843_v10, %v4843_v10 }
  0x97   :  { %v49_v13 = vsel %vm32_vm0, %v45_v12, 0.0  ;;  %v4026_v12 = vld [vmem:[%s5578_s2 + $0x168] sm:$0xff] }
  0x98   :  { %50 = vadd.xlane.f32.xlu1 %v49_v13  ;;  %v4021_v13 = vld [vmem:[%s5578_s2 + $0x140] sm:$0xff] }
 0x11d   :  { %v48_v23 = vpop.xlane.xlu1 %47 }
 0x11e   :  { %v52_v24 = vmul.f32 0.03125, %v48_v23  ;;  %v4033_v23 = vld [vmem:[%s5578_s2 + $0x1a0] sm:$0xff] }
 0x120   :  { %v54_v25 = vadd.f32 1e-05, %v52_v24  ;;  %v4040_v24 = vld [vmem:[%s5578_s2 + $0x1d8] sm:$0xff] }
 0x121   :  { %v51_v26 = vpop.xlane.xlu1 %50 }
 0x122   :  { %4727 = vrsqrt.f32 %v54_v25  ;;  %v53_v27 = vmul.f32 0.03125, %v51_v26  ;;  %v4044_v25 = vld [vmem:[%s5578_s2 + $0x1f8] sm:$0xff]  ;;  %v4039_v26 = vld [vmem:[%s5578_s2 + $0x1d0] sm:$0xff] }
 0x124   :  { %v55_v28 = vadd.f32 1e-05, %v53_v27  ;;  %v4043_v27 = vld [vmem:[%s5578_s2 + $0x1f0] sm:$0xff] }
 0x126   :  { %4729 = vrsqrt.f32 %v55_v28  ;;  %v4038_v28 = vld [vmem:[%s5578_s2 + $0x1c8] sm:$0xff] }
 0x12f   :  { %v4728_v29 = vpop.eup %4727 }
 0x130   :  { %v58_v31 = vmul.f32 %v4728_v29, %v42_v6  ;;  %v4017_v6 = vld [vmem:[%s5578_s2 + $0x120] sm:$0xff]  ;;  %v4042_v29 = vld [vmem:[%s5578_s2 + $0x1e8] sm:$0xff] }
 0x132   :  { %v64_v33 = vmul.f32 %v4003_v30, %v58_v31  ;;  %v4041_v31 = vld [vmem:[%s5578_s2 + $0x1e0] sm:$0xff] }
 0x133   :  { %v4730_v43 = vpop.eup %4729 }
 0x134   :  { %v4893_v34 = vadd.f32 %v4004_v32, %v64_v33  ;;  %v59_v46 = vmul.f32 %v4730_v43, %v4843_v10  ;;  %v4027_v10 = vld [vmem:[%s5578_s2 + $0x170] sm:$0xff]  ;;  %v4060_v33 = vld [vmem:[%s5578_s2 + $0x238] sm:$0xff] }
 0x135   :  { %v4063_v43 = vld [vmem:[%s5578_s2 + $0x250] sm:$0xff] }
 0x136   :  { %4325 = vmatmul.mubr.msk.f32.vlgmr.msra.gmra.mxu0 %vm32_vm0, %v4893_v34  ;;  %4336 = vmatmul.mubr.msk.f32.vlgmr.msra.gmra.mxu1 %vm32_vm0, %v4893_v34  ;;  %v65_v51 = vmul.f32 %v4003_v30, %v59_v46  ;;  %v4037_v30 = vld [vmem:[%s5578_s2 + $0x1c0] sm:$0xff]  ;;  %v4066_v46 = vld [vmem:[%s5578_s2 + $0x268] sm:$0xff] }
 0x137   :  { %4339 = vmatpush3.msra.mxu0 %v83_v35  ;;  %4350 = vmatpush3.msra.mxu1 %v87_v36  ;;  %v4055_v35 = vld [vmem:[%s5578_s2 + $0x210] sm:$0xff] }
 0x138   :  { %4340 = vmatprep.subr.mxu0 %v4795_v14  ;;  %4351 = vmatprep.subr.mxu1 %v4795_v14  ;;  %v4970_v54 = vadd.f32 %v4004_v32, %v65_v51  ;;  %v4056_v32 = vld [vmem:[%s5578_s2 + $0x218] sm:$0xff]  ;;  %v4059_v36 = vld [vmem:[%s5578_s2 + $0x230] sm:$0xff] }
 0x139   :  { %4341 = vmatpush3.msra.mxu0 %v82_v37  ;;  %4352 = vmatpush3.msra.mxu1 %v86_v38  ;;  %v4054_v37 = vld [vmem:[%s5578_s2 + $0x208] sm:$0xff]  ;;  %v4071_v51 = vld [vmem:[%s5578_s2 + $0x290] sm:$0xff] }
 0x13a   :  { %4342 = vmatprep.subr.mxu0 %v4795_v14  ;;  %4353 = vmatprep.subr.mxu1 %v4795_v14  ;;  %v4058_v38 = vld [vmem:[%s5578_s2 + $0x228] sm:$0xff] }
 0x13b   :  { %4343 = vmatpush3.msra.mxu0 %v81_v39  ;;  %4354 = vmatpush3.msra.mxu1 %v85_v40  ;;  %v4053_v39 = vld [vmem:[%s5578_s2 + $0x200] sm:$0xff] }
 0x13c   :  { %4344 = vmatprep.subr.mxu0 %v4795_v14  ;;  %4355 = vmatprep.subr.mxu1 %v4795_v14  ;;  %v4057_v40 = vld [vmem:[%s5578_s2 + $0x220] sm:$0xff] }
 0x13d   :  { %4345 = vmatpush3.msra.mxu0 %v80_v41  ;;  %4346 = vmatprep.mubr.msk.f32.mxu0 %vm4796_vm1, %v4795_v14  ;;  %v4064_v41 = vld [vmem:[%s5578_s2 + $0x258] sm:$0xff] }
 0x13e   :  { %4356 = vmatpush3.msra.mxu1 %v84_v42  ;;  %4357 = vmatprep.mubr.msk.f32.mxu1 %vm4796_vm1, %v4795_v14  ;;  %v4068_v42 = vld [vmem:[%s5578_s2 + $0x278] sm:$0xff] }
 0x13f   :  { %4347 = vmatmul.mubr.msk.f32.vlgmr.msra.gmra.mxu0 %vm32_vm0, %v4893_v34  ;;  %4358 = vmatmul.mubr.msk.f32.vlgmr.msra.gmra.mxu1 %vm32_vm0, %v4893_v34 }
 0x140   :  { %4360 = vmatprep.subr.mxu0 %v4795_v14  ;;  %4371 = vmatprep.subr.mxu1 %v4795_v14 }
 0x141   :  { %4361 = vmatpush3.msra.mxu0 %v91_v44  ;;  %4372 = vmatpush3.msra.mxu1 %v95_v45  ;;  %v4067_v44 = vld [vmem:[%s5578_s2 + $0x270] sm:$0xff]  ;;  %v4062_v45 = vld [vmem:[%s5578_s2 + $0x248] sm:$0xff] }
 0x142   :  { %4362 = vmatprep.subr.mxu0 %v4795_v14  ;;  %4373 = vmatprep.subr.mxu1 %v4795_v14 }
 0x143   :  { %4363 = vmatpush3.msra.mxu0 %v90_v47  ;;  %4374 = vmatpush3.msra.mxu1 %v94_v48  ;;  %v4061_v47 = vld [vmem:[%s5578_s2 + $0x240] sm:$0xff] }
 0x144   :  { %4364 = vmatprep.subr.mxu0 %v4795_v14  ;;  %4375 = vmatprep.subr.mxu1 %v4795_v14  ;;  %v4065_v48 = vld [vmem:[%s5578_s2 + $0x260] sm:$0xff] }
 0x145   :  { %4365 = vmatpush3.msra.mxu0 %v89_v49  ;;  %4376 = vmatpush3.msra.mxu1 %v93_v50  ;;  %v4072_v49 = vld [vmem:[%s5578_s2 + $0x298] sm:$0xff] }
 0x146   :  { %4366 = vmatprep.subr.mxu0 %v4795_v14  ;;  %4377 = vmatprep.subr.mxu1 %v4795_v14  ;;  %v4076_v50 = vld [vmem:[%s5578_s2 + $0x2b8] sm:$0xff] }
 0x147   :  { %4367 = vmatpush3.msra.mxu0 %v88_v52  ;;  %4368 = vmatprep.mubr.msk.f32.mxu0 %vm4796_vm1, %v4795_v14  ;;  %v4075_v52 = vld [vmem:[%s5578_s2 + $0x2b0] sm:$0xff] }
 0x148   :  { %4378 = vmatpush3.msra.mxu1 %v92_v53  ;;  %4379 = vmatprep.mubr.msk.f32.mxu1 %vm4796_vm1, %v4795_v14  ;;  %v4074_v53 = vld [vmem:[%s5578_s2 + $0x2a8] sm:$0xff] }
 0x149   :  { %4369 = vmatmul.mubr.msk.f32.vlgmr.msra.gmra.mxu0 %vm32_vm0, %v4970_v54  ;;  %4380 = vmatmul.mubr.msk.f32.vlgmr.msra.gmra.mxu1 %vm32_vm0, %v4970_v54 }
 0x14a   :  { %4382 = vmatprep.subr.mxu0 %v4795_v14  ;;  %4393 = vmatprep.subr.mxu1 %v4795_v14 }
 0x14b   :  { %4383 = vmatpush3.msra.mxu0 %v99_v55  ;;  %4394 = vmatpush3.msra.mxu1 %v103_v56  ;;  %v4069_v55 = vld [vmem:[%s5578_s2 + $0x280] sm:$0xff] }
 0x14c   :  { %4384 = vmatprep.subr.mxu0 %v4795_v14  ;;  %4395 = vmatprep.subr.mxu1 %v4795_v14  ;;  %v4073_v56 = vld [vmem:[%s5578_s2 + $0x2a0] sm:$0xff] }
 0x14d   :  { %4385 = vmatpush3.msra.mxu0 %v98_v57  ;;  %4396 = vmatpush3.msra.mxu1 %v102_v58  ;;  %v4080_v57 = vld [vmem:[%s5578_s2 + $0x2d8] sm:$0xff] }
 0x14e   :  { %4386 = vmatprep.subr.mxu0 %v4795_v14  ;;  %4397 = vmatprep.subr.mxu1 %v4795_v14  ;;  %v4084_v58 = vld [vmem:[%s5578_s2 + $0x2f8] sm:$0xff] }
 0x14f   :  { %4387 = vmatpush3.msra.mxu0 %v97_v59  ;;  %4398 = vmatpush3.msra.mxu1 %v101_v60  ;;  %v4079_v59 = vld [vmem:[%s5578_s2 + $0x2d0] sm:$0xff] }
 0x150   :  { %4388 = vmatprep.subr.mxu0 %v4795_v14  ;;  %4399 = vmatprep.subr.mxu1 %v4795_v14  ;;  %v4083_v60 = vld [vmem:[%s5578_s2 + $0x2f0] sm:$0xff] }
 0x151   :  { %4389 = vmatpush3.msra.mxu0 %v96_v61  ;;  %4390 = vmatprep.mubr.msk.f32.mxu0 %vm4796_vm1, %v4795_v14  ;;  %v4078_v61 = vld [vmem:[%s5578_s2 + $0x2c8] sm:$0xff] }
 0x152   :  { %4400 = vmatpush3.msra.mxu1 %v100_v62  ;;  %4401 = vmatprep.mubr.msk.f32.mxu1 %vm4796_vm1, %v4795_v14  ;;  %v4082_v62 = vld [vmem:[%s5578_s2 + $0x2e8] sm:$0xff] }
 0x153   :  { %4391 = vmatmul.mubr.msk.f32.vlgmr.msra.gmra.mxu0 %vm32_vm0, %v4970_v54  ;;  %4402 = vmatmul.mubr.msk.f32.vlgmr.msra.gmra.mxu1 %vm32_vm0, %v4970_v54 }
 0x154   :  { %4404 = vmatprep.subr.mxu0 %v4795_v14  ;;  %4415 = vmatprep.subr.mxu1 %v4795_v14 }
 0x155   :  { %4405 = vmatpush3.msra.mxu0 %v4016_v63  ;;  %4416 = vmatpush3.msra.mxu1 %v4020_v0  ;;  %v4077_v63 = vld [vmem:[%s5578_s2 + $0x2c0] sm:$0xff] }
 0x156   :  { %4406 = vmatprep.subr.mxu0 %v4795_v14  ;;  %4417 = vmatprep.subr.mxu1 %v4795_v14  ;;  %v4081_v0 = vld [vmem:[%s5578_s2 + $0x2e0] sm:$0xff] }
 0x157   :  { %4407 = vmatpush3.msra.mxu0 %v4015_v1  ;;  %4418 = vmatpush3.msra.mxu1 %v4019_v2 }
 0x158   :  { %4408 = vmatprep.subr.mxu0 %v4795_v14  ;;  %4419 = vmatprep.subr.mxu1 %v4795_v14 }
 0x159   :  { %4409 = vmatpush3.msra.mxu0 %v4014_v3  ;;  %4420 = vmatpush3.msra.mxu1 %v4018_v4 }
 0x15a   :  { %4410 = vmatprep.subr.mxu0 %v4795_v14  ;;  %4421 = vmatprep.subr.mxu1 %v4795_v14 }
 0x15b   :  { %4411 = vmatpush3.msra.mxu0 %v4013_v5  ;;  %4412 = vmatprep.mubr.msk.f32.mxu0 %vm4796_vm1, %v4795_v14 }
 0x15c   :  { %4422 = vmatpush3.msra.mxu1 %v4017_v6  ;;  %4423 = vmatprep.mubr.msk.f32.mxu1 %vm4796_vm1, %v4795_v14 }
 0x15d   :  { %4413 = vmatmul.mubr.msk.f32.vlgmr.msra.gmra.mxu0 %vm32_vm0, %v4893_v34  ;;  %4424 = vmatmul.mubr.msk.f32.vlgmr.msra.gmra.mxu1 %vm32_vm0, %v4893_v34 }
 0x15e   :  { %4426 = vmatprep.subr.mxu0 %v4795_v14  ;;  %4437 = vmatprep.subr.mxu1 %v4795_v14 }
 0x15f   :  { %4427 = vmatpush3.msra.mxu0 %v4024_v7  ;;  %4438 = vmatpush3.msra.mxu1 %v4028_v8 }
 0x160   :  { %4428 = vmatprep.subr.mxu0 %v4795_v14  ;;  %4439 = vmatprep.subr.mxu1 %v4795_v14 }
 0x161   :  { %4429 = vmatpush3.msra.mxu0 %v4023_v9  ;;  %4440 = vmatpush3.msra.mxu1 %v4027_v10 }
 0x162   :  { %4430 = vmatprep.subr.mxu0 %v4795_v14  ;;  %4441 = vmatprep.subr.mxu1 %v4795_v14 }
 0x163   :  { %4431 = vmatpush3.msra.mxu0 %v4022_v11  ;;  %4442 = vmatpush3.msra.mxu1 %v4026_v12 }
 0x164   :  { %4432 = vmatprep.subr.mxu0 %v4795_v14  ;;  %4443 = vmatprep.subr.mxu1 %v4795_v14 }
 0x165   :  { %4433 = vmatpush3.msra.mxu0 %v4021_v13  ;;  %4434 = vmatprep.mubr.msk.f32.mxu0 %vm4796_vm1, %v4795_v14 }
 0x166   :  { %4444 = vmatpush3.msra.mxu1 %v4025_v15  ;;  %4445 = vmatprep.mubr.msk.f32.mxu1 %vm4796_vm1, %v4795_v14 }
 0x167   :  { %4435 = vmatmul.mubr.msk.f32.vlgmr.msra.gmra.mxu0 %vm32_vm0, %v4893_v34  ;;  %4446 = vmatmul.mubr.msk.f32.vlgmr.msra.gmra.mxu1 %vm32_vm0, %v4893_v34 }
 0x168   :  { %4448 = vmatprep.subr.mxu0 %v4795_v14  ;;  %4459 = vmatprep.subr.mxu1 %v4795_v14 }
 0x169   :  { %4449 = vmatpush3.msra.mxu0 %v4032_v16  ;;  %4460 = vmatpush3.msra.mxu1 %v4036_v17 }
 0x16a   :  { %4450 = vmatprep.subr.mxu0 %v4795_v14  ;;  %4461 = vmatprep.subr.mxu1 %v4795_v14 }
 0x16b   :  { %4451 = vmatpush3.msra.mxu0 %v4031_v18  ;;  %4462 = vmatpush3.msra.mxu1 %v4035_v19 }
 0x16c   :  { %4452 = vmatprep.subr.mxu0 %v4795_v14  ;;  %4463 = vmatprep.subr.mxu1 %v4795_v14 }
 0x16d   :  { %4453 = vmatpush3.msra.mxu0 %v4030_v20  ;;  %4464 = vmatpush3.msra.mxu1 %v4034_v21 }
 0x16e   :  { %4454 = vmatprep.subr.mxu0 %v4795_v14  ;;  %4465 = vmatprep.subr.mxu1 %v4795_v14 }
 0x16f   :  { %4455 = vmatpush3.msra.mxu0 %v4029_v22  ;;  %4456 = vmatprep.mubr.msk.f32.mxu0 %vm4796_vm1, %v4795_v14 }
 0x170   :  { %4466 = vmatpush3.msra.mxu1 %v4033_v23  ;;  %4467 = vmatprep.mubr.msk.f32.mxu1 %vm4796_vm1, %v4795_v14 }
 0x171   :  { %4457 = vmatmul.mubr.msk.f32.vlgmr.msra.gmra.mxu0 %vm32_vm0, %v4970_v54  ;;  %4468 = vmatmul.mubr.msk.f32.vlgmr.msra.gmra.mxu1 %vm32_vm0, %v4970_v54 }
 0x172   :  { %4470 = vmatprep.subr.mxu0 %v4795_v14  ;;  %4481 = vmatprep.subr.mxu1 %v4795_v14 }
 0x173   :  { %4471 = vmatpush3.msra.mxu0 %v4040_v24  ;;  %4482 = vmatpush3.msra.mxu1 %v4044_v25 }
 0x174   :  { %4472 = vmatprep.subr.mxu0 %v4795_v14  ;;  %4483 = vmatprep.subr.mxu1 %v4795_v14 }
 0x175   :  { %4473 = vmatpush3.msra.mxu0 %v4039_v26  ;;  %4484 = vmatpush3.msra.mxu1 %v4043_v27 }
 0x176   :  { %4474 = vmatprep.subr.mxu0 %v4795_v14  ;;  %4485 = vmatprep.subr.mxu1 %v4795_v14 }
 0x177   :  { %4475 = vmatpush3.msra.mxu0 %v4038_v28  ;;  %4486 = vmatpush3.msra.mxu1 %v4042_v29 }
 0x178   :  { %4476 = vmatprep.subr.mxu0 %v4795_v14  ;;  %4487 = vmatprep.subr.mxu1 %v4795_v14 }
 0x179   :  { %4477 = vmatpush3.msra.mxu0 %v4037_v30  ;;  %4478 = vmatprep.mubr.msk.f32.mxu0 %vm4796_vm1, %v4795_v14 }
 0x17a   :  { %4488 = vmatpush3.msra.mxu1 %v4041_v31  ;;  %4489 = vmatprep.mubr.msk.f32.mxu1 %vm4796_vm1, %v4795_v14 }
 0x17b   :  { %4479 = vmatmul.mubr.msk.f32.vlgmr.msra.gmra.mxu0 %vm32_vm0, %v4970_v54  ;;  %4490 = vmatmul.mubr.msk.f32.vlgmr.msra.gmra.mxu1 %vm32_vm0, %v4970_v54 }
 0x17c   :  { %4492 = vmatprep.subr.mxu0 %v4795_v14  ;;  %4503 = vmatprep.subr.mxu1 %v4795_v14 }
 0x17d   :  { %4493 = vmatpush3.msra.mxu0 %v4056_v32  ;;  %4504 = vmatpush3.msra.mxu1 %v4060_v33 }
 0x17e   :  { %4494 = vmatprep.subr.mxu0 %v4795_v14  ;;  %4505 = vmatprep.subr.mxu1 %v4795_v14 }
 0x17f   :  { %4495 = vmatpush3.msra.mxu0 %v4055_v35  ;;  %4506 = vmatpush3.msra.mxu1 %v4059_v36 }
 0x180   :  { %4496 = vmatprep.subr.mxu0 %v4795_v14  ;;  %4507 = vmatprep.subr.mxu1 %v4795_v14 }
 0x181   :  { %4497 = vmatpush3.msra.mxu0 %v4054_v37  ;;  %4508 = vmatpush3.msra.mxu1 %v4058_v38 }
 0x182   :  { %4498 = vmatprep.subr.mxu0 %v4795_v14  ;;  %4509 = vmatprep.subr.mxu1 %v4795_v14 }
 0x183   :  { %4499 = vmatpush3.msra.mxu0 %v4053_v39  ;;  %4500 = vmatprep.mubr.msk.f32.mxu0 %vm4796_vm1, %v4795_v14 }
 0x184   :  { %4510 = vmatpush3.msra.mxu1 %v4057_v40  ;;  %4511 = vmatprep.mubr.msk.f32.mxu1 %vm4796_vm1, %v4795_v14 }
 0x185   :  { %4501 = vmatmul.mubr.msk.f32.vlgmr.msra.gmra.mxu0 %vm32_vm0, %v4893_v34  ;;  %4512 = vmatmul.mubr.msk.f32.vlgmr.msra.gmra.mxu1 %vm32_vm0, %v4893_v34 }
 0x186   :  { %4514 = vmatprep.subr.mxu0 %v4795_v14  ;;  %4525 = vmatprep.subr.mxu1 %v4795_v14 }
 0x187   :  { %4515 = vmatpush3.msra.mxu0 %v4064_v41  ;;  %4526 = vmatpush3.msra.mxu1 %v4068_v42 }
 0x188   :  { %4516 = vmatprep.subr.mxu0 %v4795_v14  ;;  %4527 = vmatprep.subr.mxu1 %v4795_v14 }
 0x189   :  { %4517 = vmatpush3.msra.mxu0 %v4063_v43  ;;  %4528 = vmatpush3.msra.mxu1 %v4067_v44 }
 0x18a   :  { %4518 = vmatprep.subr.mxu0 %v4795_v14  ;;  %4529 = vmatprep.subr.mxu1 %v4795_v14 }
 0x18b   :  { %4519 = vmatpush3.msra.mxu0 %v4062_v45  ;;  %4530 = vmatpush3.msra.mxu1 %v4066_v46 }
 0x18c   :  { %4520 = vmatprep.subr.mxu0 %v4795_v14  ;;  %4531 = vmatprep.subr.mxu1 %v4795_v14 }
 0x18d   :  { %4521 = vmatpush3.msra.mxu0 %v4061_v47  ;;  %4522 = vmatprep.mubr.msk.f32.mxu0 %vm4796_vm1, %v4795_v14 }
 0x18e   :  { %4532 = vmatpush3.msra.mxu1 %v4065_v48  ;;  %4533 = vmatprep.mubr.msk.f32.mxu1 %vm4796_vm1, %v4795_v14 }
 0x18f   :  { %4523 = vmatmul.mubr.msk.f32.vlgmr.msra.gmra.mxu0 %vm32_vm0, %v4893_v34  ;;  %4534 = vmatmul.mubr.msk.f32.vlgmr.msra.gmra.mxu1 %vm32_vm0, %v4893_v34  ;;  %v4070_v34 = vld [vmem:[%s5578_s2 + $0x288] sm:$0xff] }
 0x190   :  { %4536 = vmatprep.subr.mxu0 %v4795_v14  ;;  %4547 = vmatprep.subr.mxu1 %v4795_v14 }
 0x191   :  { %4537 = vmatpush3.msra.mxu0 %v4072_v49  ;;  %4548 = vmatpush3.msra.mxu1 %v4076_v50 }
 0x192   :  { %4538 = vmatprep.subr.mxu0 %v4795_v14  ;;  %4549 = vmatprep.subr.mxu1 %v4795_v14 }
 0x193   :  { %4539 = vmatpush3.msra.mxu0 %v4071_v51  ;;  %4550 = vmatpush3.msra.mxu1 %v4075_v52 }
 0x194   :  { %4540 = vmatprep.subr.mxu0 %v4795_v14  ;;  %4551 = vmatprep.subr.mxu1 %v4795_v14 }
 0x195   :  { %4541 = vmatpush3.msra.mxu0 %v4070_v34  ;;  %4552 = vmatpush3.msra.mxu1 %v4074_v53 }
 0x196   :  { %4542 = vmatprep.subr.mxu0 %v4795_v14  ;;  %4553 = vmatprep.subr.mxu1 %v4795_v14 }
 0x197   :  { %4543 = vmatpush3.msra.mxu0 %v4069_v55  ;;  %4544 = vmatprep.mubr.msk.f32.mxu0 %vm4796_vm1, %v4795_v14 }
 0x198   :  { %4554 = vmatpush3.msra.mxu1 %v4073_v56  ;;  %4555 = vmatprep.mubr.msk.f32.mxu1 %vm4796_vm1, %v4795_v14 }
 0x199   :  { %4545 = vmatmul.mubr.msk.f32.vlgmr.msra.gmra.mxu0 %vm32_vm0, %v4970_v54  ;;  %4556 = vmatmul.mubr.msk.f32.vlgmr.msra.gmra.mxu1 %vm32_vm0, %v4970_v54 }
 0x19a   :  { %4558 = vmatprep.subr.mxu0 %v4795_v14  ;;  %4569 = vmatprep.subr.mxu1 %v4795_v14 }
 0x19b   :  { %4559 = vmatpush3.msra.mxu0 %v4080_v57  ;;  %4570 = vmatpush3.msra.mxu1 %v4084_v58 }
 0x19c   :  { %4560 = vmatprep.subr.mxu0 %v4795_v14  ;;  %4571 = vmatprep.subr.mxu1 %v4795_v14 }
 0x19d   :  { %4561 = vmatpush3.msra.mxu0 %v4079_v59  ;;  %4572 = vmatpush3.msra.mxu1 %v4083_v60 }
 0x19e   :  { %4562 = vmatprep.subr.mxu0 %v4795_v14  ;;  %4573 = vmatprep.subr.mxu1 %v4795_v14 }
 0x19f   :  { %4563 = vmatpush3.msra.mxu0 %v4078_v61  ;;  %4574 = vmatpush3.msra.mxu1 %v4082_v62 }
 0x1a0   :  { %4564 = vmatprep.subr.mxu0 %v4795_v14  ;;  %4575 = vmatprep.subr.mxu1 %v4795_v14 }
 0x1a1   :  { %4565 = vmatpush3.msra.mxu0 %v4077_v63  ;;  %4566 = vmatprep.mubr.msk.f32.mxu0 %vm4796_vm1, %v4795_v14 }
 0x1a2   :  { %4576 = vmatpush3.msra.mxu1 %v4081_v0  ;;  %4577 = vmatprep.mubr.msk.f32.mxu1 %vm4796_vm1, %v4795_v14 }
 0x1a3   :  { %4567 = vmatmul.mubr.msk.f32.vlgmr.msra.gmra.mxu0 %vm32_vm0, %v4970_v54  ;;  %4578 = vmatmul.mubr.msk.f32.vlgmr.msra.gmra.mxu1 %vm32_vm0, %v4970_v54 }
 0x1a4   :  { %4580 = vmatprep.subr.mxu0 %v4795_v14  ;;  %4582 = vmatprep.mubr.msk.f32.mxu0 %vm4796_vm1, %v4795_v14 }
 0x1a5   :  { %4595 = vmatprep.subr.mxu1 %v4795_v14  ;;  %4597 = vmatprep.mubr.msk.f32.mxu1 %vm4796_vm1, %v4795_v14 }
 0x1f6   :  { %v173_v1 = vpop.f32.mrf.mxu0  ;;  %v243_v2 = vpop.f32.mrf.mxu1 }
 0x1f8   :  { %v4326_v3 = vpop.f32.mrf.mxu0  ;;  %v4337_v4 = vpop.f32.mrf.mxu1 }
 0x1ff   :  { %v313_v5 = vpop.f32.mrf.mxu0  ;;  %v383_v6 = vpop.f32.mrf.mxu1 }
 0x201   :  { %v4348_v7 = vpop.f32.mrf.mxu0  ;;  %v4359_v8 = vpop.f32.mrf.mxu1 }
 0x209   :  { %v456_v9 = vpop.f32.mrf.mxu0  ;;  %v526_v54 = vpop.f32.mrf.mxu1 }
 0x20b   :  { %v4370_v10 = vpop.f32.mrf.mxu0  ;;  %v4381_v11 = vpop.f32.mrf.mxu1 }
 0x213   :  { %v596_v12 = vpop.f32.mrf.mxu0  ;;  %v666_v13 = vpop.f32.mrf.mxu1 }
 0x215   :  { %v4392_v15 = vpop.f32.mrf.mxu0  ;;  %v4403_v16 = vpop.f32.mrf.mxu1 }
 0x21d   :  { %v769_v17 = vpop.f32.mrf.mxu0  ;;  %v839_v18 = vpop.f32.mrf.mxu1 }
 0x21e   :  { %4581 = vmatpush3.xpose.msk.msra.mxu0 %vm1856_vm2, %v769_v17 }
 0x21f   :  { %v4414_v19 = vpop.f32.mrf.mxu0  ;;  %v4425_v20 = vpop.f32.mrf.mxu1  ;;  %4585 = vmatprep.subr.mxu0 %v4795_v14 }
 0x221   :  { %4583 = vmatmul.mubr.msk.f32.vlgmr.msra.gmra.mxu0 %vm1856_vm2, %v173_v1 }
 0x222   :  { %4586 = vmatpush3.xpose.msk.msra.mxu0 %vm1856_vm2, %v839_v18  ;;  %4587 = vmatprep.mubr.msk.f32.mxu0 %vm4796_vm1, %v4795_v14 }
 0x223   :  { %4590 = vmatprep.subr.mxu0 %v4795_v14 }
 0x225   :  { %4588 = vmatmul.mubr.msk.f32.vlgmr.msra.gmra.mxu0 %vm1856_vm2, %v243_v2 }
 0x226   :  { %4592 = vmatprep.mubr.msk.f32.mxu0 %vm4796_vm1, %v4795_v14 }
 0x227   :  { %v909_v21 = vpop.f32.mrf.mxu0  ;;  %v979_v22 = vpop.f32.mrf.mxu1 }
 0x228   :  { %4591 = vmatpush3.xpose.msk.msra.mxu0 %vm1856_vm2, %v909_v21  ;;  %4596 = vmatpush3.xpose.msk.msra.mxu1 %vm1856_vm2, %v979_v22 }
 0x229   :  { %v4436_v23 = vpop.f32.mrf.mxu0  ;;  %v4447_v24 = vpop.f32.mrf.mxu1  ;;  %4600 = vmatprep.subr.mxu0 %v4795_v14  ;;  %4605 = vmatprep.subr.mxu1 %v4795_v14 }
 0x22b   :  { %4593 = vmatmul.mubr.msk.f32.vlgmr.msra.gmra.mxu0 %vm1856_vm2, %v313_v5  ;;  %4598 = vmatmul.mubr.msk.f32.vlgmr.msra.gmra.mxu1 %vm1856_vm2, %v383_v6 }
 0x22c   :  { %4602 = vmatprep.mubr.msk.f32.mxu0 %vm4796_vm1, %v4795_v14  ;;  %4607 = vmatprep.mubr.msk.f32.mxu1 %vm4796_vm1, %v4795_v14 }
 0x231   :  { %v1049_v25 = vpop.f32.mrf.mxu0  ;;  %v1119_v26 = vpop.f32.mrf.mxu1 }
 0x232   :  { %4601 = vmatpush3.xpose.msk.msra.mxu0 %vm1856_vm2, %v1049_v25  ;;  %4606 = vmatpush3.xpose.msk.msra.mxu1 %vm1856_vm2, %v1119_v26 }
 0x233   :  { %v4458_v27 = vpop.f32.mrf.mxu0  ;;  %v4469_v28 = vpop.f32.mrf.mxu1  ;;  %4610 = vmatprep.subr.mxu0 %v4795_v14  ;;  %4615 = vmatprep.subr.mxu1 %v4795_v14 }
 0x235   :  { %4603 = vmatmul.mubr.msk.f32.vlgmr.msra.gmra.mxu0 %vm1856_vm2, %v456_v9  ;;  %4608 = vmatmul.mubr.msk.f32.vlgmr.msra.gmra.mxu1 %vm1856_vm2, %v526_v54 }
 0x236   :  { %4612 = vmatprep.mubr.msk.f32.mxu0 %vm4796_vm1, %v4795_v14  ;;  %4617 = vmatprep.mubr.msk.f32.mxu1 %vm4796_vm1, %v4795_v14 }
 0x23b   :  { %v1189_v29 = vpop.f32.mrf.mxu0  ;;  %v1259_v30 = vpop.f32.mrf.mxu1 }
 0x23c   :  { %4611 = vmatpush3.xpose.msk.msra.mxu0 %vm1856_vm2, %v1189_v29  ;;  %4616 = vmatpush3.xpose.msk.msra.mxu1 %vm1856_vm2, %v1259_v30 }
 0x23d   :  { %v4480_v31 = vpop.f32.mrf.mxu0  ;;  %v4491_v32 = vpop.f32.mrf.mxu1  ;;  %4620 = vmatprep.subr.mxu0 %v4795_v14  ;;  %4625 = vmatprep.subr.mxu1 %v4795_v14 }
 0x23f   :  { %4613 = vmatmul.mubr.msk.f32.vlgmr.msra.gmra.mxu0 %vm1856_vm2, %v596_v12  ;;  %4618 = vmatmul.mubr.msk.f32.vlgmr.msra.gmra.mxu1 %vm1856_vm2, %v666_v13 }
 0x240   :  { %4622 = vmatprep.mubr.msk.f32.mxu0 %vm4796_vm1, %v4795_v14  ;;  %4627 = vmatprep.mubr.msk.f32.mxu1 %vm4796_vm1, %v4795_v14 }
 0x245   :  { %v1362_v33 = vpop.f32.mrf.mxu0  ;;  %v1432_v35 = vpop.f32.mrf.mxu1 }
 0x246   :  { %4621 = vmatpush3.msra.mxu0 %v1362_v33  ;;  %4626 = vmatpush3.msra.mxu1 %v1432_v35 }
 0x247   :  { %v4502_v36 = vpop.f32.mrf.mxu0  ;;  %v4513_v37 = vpop.f32.mrf.mxu1  ;;  %4630 = vmatprep.subr.mxu0 %v4795_v14  ;;  %4635 = vmatprep.subr.mxu1 %v4795_v14 }
 0x24f   :  { %v5388_v38 = vpop.f32.mrf.mxu0  ;;  %v5390_v39 = vpop.f32.mrf.mxu1 }
 0x251   :  { %v4524_v40 = vpop.f32.mrf.mxu0  ;;  %v4535_v41 = vpop.f32.mrf.mxu1 }
 0x259   :  { %v5392_v42 = vpop.f32.mrf.mxu0  ;;  %v5394_v43 = vpop.f32.mrf.mxu1 }
 0x25b   :  { %v4546_v44 = vpop.f32.mrf.mxu0  ;;  %v4557_v45 = vpop.f32.mrf.mxu1 }
 0x263   :  { %v5396_v46 = vpop.f32.mrf.mxu0  ;;  %v5398_v47 = vpop.f32.mrf.mxu1 }
 0x265   :  { %v4568_v48 = vpop.f32.mrf.mxu0  ;;  %v4579_v49 = vpop.f32.mrf.mxu1 }
 0x2e1   :  { %v1929_v50 = vpop.f32.mrf.mxu0 }
 0x2e2   :  { %v2465_v51 = vmul.f32 0.35355338, %v1929_v50 }
 0x2e3   :  { %v4584_v52 = vpop.f32.mrf.mxu0 }
 0x2e4   :  { %v2473_v34 = vsel %vm1856_vm2, %v2465_v51, -inf }
 0x2e5   :  { %2474 = vmax.xlane.f32.xlu0 %v2473_v34  ;;  %v2005_v53 = vpop.f32.mrf.mxu0 }
 0x2e6   :  { %v2466_v55 = vmul.f32 0.35355338, %v2005_v53 }
 0x2e7   :  { %v4589_v56 = vpop.f32.mrf.mxu0 }
 0x2e8   :  { %v2476_v57 = vsel %vm1856_vm2, %v2466_v55, -inf }
 0x2e9   :  { %2477 = vmax.xlane.f32.xlu1 %v2476_v57 }
 0x2eb   :  { %v2157_v58 = vpop.f32.mrf.mxu1  ;;  %v2081_v59 = vpop.f32.mrf.mxu0 }
 0x2ec   :  { %v2468_v60 = vmul.f32 0.35355338, %v2157_v58  ;;  %v2467_v61 = vmul.f32 0.35355338, %v2081_v59 }
 0x2ed   :  { %v4594_v62 = vpop.f32.mrf.mxu0  ;;  %v4599_v63 = vpop.f32.mrf.mxu1 }
 0x2ee   :  { %v2482_v0 = vsel %vm1856_vm2, %v2468_v60, -inf  ;;  %v2479_v1 = vsel %vm1856_vm2, %v2467_v61, -inf }
 0x2ef   :  { %2483 = vmax.xlane.f32.xlu1 %v2482_v0  ;;  %2480 = vmax.xlane.f32.xlu0 %v2479_v1 }
 0x2f5   :  { %v2233_v2 = vpop.f32.mrf.mxu0  ;;  %v2309_v3 = vpop.f32.mrf.mxu1 }
 0x2f6   :  { %v2469_v4 = vmul.f32 0.35355338, %v2233_v2  ;;  %v2470_v5 = vmul.f32 0.35355338, %v2309_v3 }
 0x2f7   :  { %v4604_v6 = vpop.f32.mrf.mxu0  ;;  %v4609_v7 = vpop.f32.mrf.mxu1 }
 0x2f8   :  { %v2488_v8 = vsel %vm1856_vm2, %v2470_v5, -inf  ;;  %v2485_v9 = vsel %vm1856_vm2, %v2469_v4, -inf }
 0x2f9   :  { %2489 = vmax.xlane.f32.xlu1 %v2488_v8  ;;  %2486 = vmax.xlane.f32.xlu0 %v2485_v9 }
 0x2ff   :  { %v2385_v54 = vpop.f32.mrf.mxu0  ;;  %v2461_v10 = vpop.f32.mrf.mxu1 }
 0x300   :  { %v2471_v11 = vmul.f32 0.35355338, %v2385_v54  ;;  %v2472_v12 = vmul.f32 0.35355338, %v2461_v10 }
 0x301   :  { %v4614_v13 = vpop.f32.mrf.mxu0  ;;  %v4619_v15 = vpop.f32.mrf.mxu1 }
 0x302   :  { %v2494_v16 = vsel %vm1856_vm2, %v2472_v12, -inf  ;;  %v2491_v17 = vsel %vm1856_vm2, %v2471_v11, -inf }
 0x303   :  { %2495 = vmax.xlane.f32.xlu1 %v2494_v16  ;;  %2492 = vmax.xlane.f32.xlu0 %v2491_v17 }
 0x36e   :  { %v2475_v18 = vpop.xlane.xlu0 %2474 }
 0x36f   :  { %v2497_v19 = vsub.f32 %v2465_v51, %v2475_v18 }
 0x371   :  { %v2505_v20 = vmul.f32 1.442695, %v2497_v19 }
 0x372   :  { %v2478_v21 = vpop.xlane.xlu1 %2477 }
 0x373   :  { %4731 = vpow2.f32 %v2505_v20  ;;  %v2498_v22 = vsub.f32 %v2466_v55, %v2478_v21  ;;  %v3147_v21 = vld [vmem:[%s5579_s3 + $0x10] sm:$0xff] }
 0x375   :  { %v2507_v23 = vmul.f32 1.442695, %v2498_v22 }
 0x377   :  { %4733 = vpow2.f32 %v2507_v23 }
 0x378   :  { %v2484_v24 = vpop.xlane.xlu1 %2483  ;;  %v2481_v25 = vpop.xlane.xlu0 %2480 }
 0x379   :  { %v2500_v26 = vsub.f32 %v2468_v60, %v2484_v24  ;;  %v2499_v27 = vsub.f32 %v2467_v61, %v2481_v25  ;;  %v3148_v24 = vld [vmem:[%s5579_s3 + $0x18] sm:$0xff] }
 0x37b   :  { %v2511_v28 = vmul.f32 1.442695, %v2500_v26  ;;  %v2509_v29 = vmul.f32 1.442695, %v2499_v27  ;;  %v3150_v27 = vld [vmem:[%s5579_s3 + $0x28] sm:$0xff] }
 0x37d   :  { %4735 = vpow2.f32 %v2511_v28 }
 0x37e   :  { %4737 = vpow2.f32 %v2509_v29  ;;  %v3149_v29 = vld [vmem:[%s5579_s3 + $0x20] sm:$0xff] }
 0x380   :  { %v4732_v30 = vpop.eup %4731 }
 0x381   :  { %v2521_v31 = vsel %vm1856_vm2, %v4732_v30, 0.0 }
 0x382   :  { %v2490_v32 = vpop.xlane.xlu1 %2489  ;;  %v2487_v33 = vpop.xlane.xlu0 %2486  ;;  %2522 = vadd.xlane.f32.xlu0 %v2521_v31 }
 0x383   :  { %v2502_v35 = vsub.f32 %v2470_v5, %v2490_v32  ;;  %v2501_v36 = vsub.f32 %v2469_v4, %v2487_v33  ;;  %v3152_v33 = vld [vmem:[%s5579_s3 + $0x38] sm:$0xff] }
 0x384   :  { %v4734_v37 = vpop.eup %4733 }
 0x385   :  { %v2515_v40 = vmul.f32 1.442695, %v2502_v35  ;;  %v2513_v41 = vmul.f32 1.442695, %v2501_v36  ;;  %v2524_v44 = vsel %vm1856_vm2, %v4734_v37, 0.0  ;;  %v3151_v36 = vld [vmem:[%s5579_s3 + $0x30] sm:$0xff] }
 0x386   :  { %2525 = vadd.xlane.f32.xlu1 %v2524_v44 }
 0x387   :  { %4739 = vpow2.f32 %v2515_v40 }
 0x388   :  { %4741 = vpow2.f32 %v2513_v41 }
 0x38a   :  { %v4736_v45 = vpop.eup %4735 }
 0x38b   :  { %v4738_v48 = vpop.eup %4737  ;;  %v2530_v49 = vsel %vm1856_vm2, %v4736_v45, 0.0 }
 0x38c   :  { %v2496_v50 = vpop.xlane.xlu1 %2495  ;;  %v2493_v51 = vpop.xlane.xlu0 %2492  ;;  %2531 = vadd.xlane.f32.xlu1 %v2530_v49  ;;  %v2527_v52 = vsel %vm1856_vm2, %v4738_v48, 0.0 }
 0x38d   :  { %v2504_v34 = vsub.f32 %v2472_v12, %v2496_v50  ;;  %v2503_v53 = vsub.f32 %v2471_v11, %v2493_v51  ;;  %2528 = vadd.xlane.f32.xlu0 %v2527_v52 }
 0x38f   :  { %v2519_v55 = vmul.f32 1.442695, %v2504_v34  ;;  %v2517_v56 = vmul.f32 1.442695, %v2503_v53 }
 0x391   :  { %4743 = vpow2.f32 %v2519_v55 }
 0x392   :  { %4745 = vpow2.f32 %v2517_v56 }
 0x394   :  { %v4740_v57 = vpop.eup %4739 }
 0x395   :  { %v4742_v58 = vpop.eup %4741  ;;  %v2536_v59 = vsel %vm1856_vm2, %v4740_v57, 0.0 }
 0x396   :  { %2537 = vadd.xlane.f32.xlu1 %v2536_v59  ;;  %v2533_v60 = vsel %vm1856_vm2, %v4742_v58, 0.0 }
 0x397   :  { %2534 = vadd.xlane.f32.xlu0 %v2533_v60 }
 0x39e   :  { %v4744_v61 = vpop.eup %4743 }
 0x39f   :  { %v4746_v62 = vpop.eup %4745  ;;  %v2542_v63 = vsel %vm1856_vm2, %v4744_v61, 0.0 }
 0x3a0   :  { %2543 = vadd.xlane.f32.xlu1 %v2542_v63  ;;  %v2539_v0 = vsel %vm1856_vm2, %v4746_v62, 0.0 }
 0x3a1   :  { %2540 = vadd.xlane.f32.xlu0 %v2539_v0 }
 0x40b   :  { %v2523_v1 = vpop.xlane.xlu0 %2522 }
 0x40c   :  { %4747 = vrcp.f32 %v2523_v1 }
 0x40f   :  { %v2526_v2 = vpop.xlane.xlu1 %2525 }
 0x410   :  { %4749 = vrcp.f32 %v2526_v2  ;;  %v4771_v2 = vld [vmem:[%s5576_s0] sm:$0xff] }
 0x415   :  { %v2532_v3 = vpop.xlane.xlu1 %2531 }
 0x416   :  { %4751 = vrcp.f32 %v2532_v3  ;;  %v2529_v4 = vpop.xlane.xlu0 %2528 }
 0x417   :  { %4753 = vrcp.f32 %v2529_v4 }
 0x419   :  { %v4748_v5 = vpop.eup %4747 }
 0x41a   :  { %v2553_v6 = vmul.f32 %v4748_v5, %v4732_v30 }
 0x41c   :  { %4623 = vmatmul.mubr.msk.f32.vlgmr.msra.gmra.mxu0 %vm1856_vm2, %v2553_v6 }
 0x41d   :  { %v4750_v7 = vpop.eup %4749  ;;  %4631 = vmatpush3.msra.mxu0 %v5388_v38  ;;  %4632 = vmatprep.mubr.msk.f32.mxu0 %vm4796_vm1, %v4795_v14 }
 0x41e   :  { %v2554_v8 = vmul.f32 %v4750_v7, %v4734_v37  ;;  %4640 = vmatprep.subr.mxu0 %v4795_v14 }
 0x41f   :  { %v2538_v9 = vpop.xlane.xlu1 %2537 }
 0x420   :  { %4755 = vrcp.f32 %v2538_v9  ;;  %v2535_v54 = vpop.xlane.xlu0 %2534  ;;  %4628 = vmatmul.mubr.msk.f32.vlgmr.msra.gmra.mxu1 %vm1856_vm2, %v2554_v8 }
 0x421   :  { %4757 = vrcp.f32 %v2535_v54  ;;  %4636 = vmatpush3.msra.mxu1 %v5390_v39  ;;  %4637 = vmatprep.mubr.msk.f32.mxu1 %vm4796_vm1, %v4795_v14 }
 0x422   :  { %4645 = vmatprep.subr.mxu1 %v4795_v14 }
 0x423   :  { %v4752_v38 = vpop.eup %4751 }
 0x424   :  { %v4754_v10 = vpop.eup %4753  ;;  %v2556_v11 = vmul.f32 %v4752_v38, %v4736_v45 }
 0x425   :  { %v2555_v12 = vmul.f32 %v4754_v10, %v4738_v48 }
 0x426   :  { %4638 = vmatmul.mubr.msk.f32.vlgmr.msra.gmra.mxu1 %vm1856_vm2, %v2556_v11 }
 0x427   :  { %4633 = vmatmul.mubr.msk.f32.vlgmr.msra.gmra.mxu0 %vm1856_vm2, %v2555_v12  ;;  %4646 = vmatpush3.msra.mxu1 %v5394_v43 }
 0x428   :  { %4641 = vmatpush3.msra.mxu0 %v5392_v42  ;;  %4642 = vmatprep.mubr.msk.f32.mxu0 %vm4796_vm1, %v4795_v14 }
 0x429   :  { %v2544_v39 = vpop.xlane.xlu1 %2543  ;;  %4647 = vmatprep.mubr.msk.f32.mxu1 %vm4796_vm1, %v4795_v14  ;;  %4650 = vmatprep.subr.mxu0 %v4795_v14 }
 0x42a   :  { %4759 = vrcp.f32 %v2544_v39  ;;  %v2541_v13 = vpop.xlane.xlu0 %2540  ;;  %4655 = vmatprep.subr.mxu1 %v4795_v14 }
 0x42b   :  { %4761 = vrcp.f32 %v2541_v13 }
 0x42d   :  { %v4756_v15 = vpop.eup %4755 }
 0x42e   :  { %v4758_v16 = vpop.eup %4757  ;;  %v2558_v17 = vmul.f32 %v4756_v15, %v4740_v57 }
 0x42f   :  { %v2557_v43 = vmul.f32 %v4758_v16, %v4742_v58 }
 0x430   :  { %4648 = vmatmul.mubr.msk.f32.vlgmr.msra.gmra.mxu1 %vm1856_vm2, %v2558_v17 }
 0x431   :  { %4643 = vmatmul.mubr.msk.f32.vlgmr.msra.gmra.mxu0 %vm1856_vm2, %v2557_v43  ;;  %4656 = vmatpush3.msra.mxu1 %v5398_v47  ;;  %v3146_v47 = vld [vmem:[%s5579_s3 + $0x8] sm:$0xff] }
 0x432   :  { %4651 = vmatpush3.msra.mxu0 %v5396_v46  ;;  %4652 = vmatprep.mubr.msk.f32.mxu0 %vm4796_vm1, %v4795_v14  ;;  %v3145_v46 = vld [vmem:[%s5579_s3] sm:$0xff] }
 0x433   :  { %4657 = vmatprep.mubr.msk.f32.mxu1 %vm4796_vm1, %v4795_v14  ;;  %4660 = vmatprep.subr.mxu0 %v4795_v14 }
 0x434   :  { %4665 = vmatprep.subr.mxu1 %v4795_v14 }
 0x437   :  { %v4760_v42 = vpop.eup %4759 }
 0x438   :  { %v4762_v18 = vpop.eup %4761  ;;  %v2560_v19 = vmul.f32 %v4760_v42, %v4744_v61  ;;  %v4772_v42 = vld [vmem:[%s5576_s0 + $0x8] sm:$0xff] }
 0x439   :  { %v2559_v20 = vmul.f32 %v4762_v18, %v4746_v62  ;;  %v4125_v62 = vld [vmem:[%s5577_s1 + $0x4] ss:$0 sm:$0xff] }
 0x43a   :  { %4658 = vmatmul.mubr.msk.f32.vlgmr.msra.gmra.mxu1 %vm1856_vm2, %v2560_v19 }
 0x43b   :  { %4653 = vmatmul.mubr.msk.f32.vlgmr.msra.gmra.mxu0 %vm1856_vm2, %v2559_v20  ;;  %4667 = vmatprep.mubr.msk.f32.mxu1 %vm4796_vm1, %v4795_v14 }
 0x43c   :  { %4662 = vmatprep.mubr.msk.f32.mxu0 %vm4796_vm1, %v4795_v14  ;;  %4661 = vmatpush3.msra.mxu0 %v3145_v46 }
 0x43d   :  { %4670 = vmatprep.subr.mxu0 %v4795_v14  ;;  %4666 = vmatpush3.msra.mxu1 %v3146_v47 }
 0x43e   :  { %4675 = vmatprep.subr.mxu1 %v4795_v14 }
 0x4dc   :  { %v2630_v22 = vpop.f32.mrf.mxu0 }
 0x4dd   :  { %4663 = vmatmul.mubr.msk.f32.vlgmr.msra.gmra.mxu0 %vm1856_vm2, %v2630_v22 }
 0x4de   :  { %v4624_v23 = vpop.f32.mrf.mxu0  ;;  %4671 = vmatpush3.msra.mxu0 %v3147_v21  ;;  %4672 = vmatprep.mubr.msk.f32.mxu0 %vm4796_vm1, %v4795_v14 }
 0x4df   :  { %4680 = vmatprep.subr.mxu0 %v4795_v14 }
 0x4e0   :  { %v2703_v25 = vpop.f32.mrf.mxu1 }
 0x4e1   :  { %4668 = vmatmul.mubr.msk.f32.vlgmr.msra.gmra.mxu1 %vm1856_vm2, %v2703_v25 }
 0x4e2   :  { %v4629_v26 = vpop.f32.mrf.mxu1  ;;  %4676 = vmatpush3.msra.mxu1 %v3148_v24  ;;  %4677 = vmatprep.mubr.msk.f32.mxu1 %vm4796_vm1, %v4795_v14 }
 0x4e3   :  { %4685 = vmatprep.subr.mxu1 %v4795_v14 }
 0x4e6   :  { %v2849_v28 = vpop.f32.mrf.mxu1 }
 0x4e7   :  { %v2776_v30 = vpop.f32.mrf.mxu0  ;;  %4678 = vmatmul.mubr.msk.f32.vlgmr.msra.gmra.mxu1 %vm1856_vm2, %v2849_v28  ;;  %v3800_v28 = vld [vmem:[%s5580_s4 + $0x18] sm:$0xff] }
 0x4e8   :  { %4673 = vmatmul.mubr.msk.f32.vlgmr.msra.gmra.mxu0 %vm1856_vm2, %v2776_v30  ;;  %v4639_v31 = vpop.f32.mrf.mxu1  ;;  %4686 = vmatpush3.msra.mxu1 %v3150_v27  ;;  %v3798_v30 = vld [vmem:[%s5580_s4 + $0x8] sm:$0xff] }
 0x4e9   :  { %v4634_v32 = vpop.f32.mrf.mxu0  ;;  %4681 = vmatpush3.msra.mxu0 %v3149_v29  ;;  %4682 = vmatprep.mubr.msk.f32.mxu0 %vm4796_vm1, %v4795_v14  ;;  %v3799_v29 = vld [vmem:[%s5580_s4 + $0x10] sm:$0xff]  ;;  %v3797_v31 = vld [vmem:[%s5580_s4] sm:$0xff] }
 0x4ea   :  { %4687 = vmatprep.mubr.msk.f32.mxu1 %vm4796_vm1, %v4795_v14  ;;  %4690 = vmatprep.subr.mxu0 %v4795_v14 }
 0x4eb   :  { %4695 = vmatprep.subr.mxu1 %v4795_v14 }
 0x4f0   :  { %v2995_v35 = vpop.f32.mrf.mxu1 }
 0x4f1   :  { %v2922_v37 = vpop.f32.mrf.mxu0  ;;  %4688 = vmatmul.mubr.msk.f32.vlgmr.msra.gmra.mxu1 %vm1856_vm2, %v2995_v35 }
 0x4f2   :  { %4683 = vmatmul.mubr.msk.f32.vlgmr.msra.gmra.mxu0 %vm1856_vm2, %v2922_v37  ;;  %v4649_v40 = vpop.f32.mrf.mxu1  ;;  %4696 = vmatpush3.msra.mxu1 %v3152_v33  ;;  %v4126_v37 = vld [vmem:[%s5577_s1 + $0x2] ss:$0 sm:$0xff] }
 0x4f3   :  { %v4644_v41 = vpop.f32.mrf.mxu0  ;;  %4691 = vmatpush3.msra.mxu0 %v3151_v36  ;;  %4692 = vmatprep.mubr.msk.f32.mxu0 %vm4796_vm1, %v4795_v14 }
 0x4f4   :  { %4697 = vmatprep.mubr.msk.f32.mxu1 %vm4796_vm1, %v4795_v14  ;;  %4700 = vmatprep.subr.mxu0 %v3800_v28 }
 0x4fa   :  { %v3141_v44 = vpop.f32.mrf.mxu1 }
 0x4fb   :  { %v3068_v45 = vpop.f32.mrf.mxu0  ;;  %4698 = vmatmul.mubr.msk.f32.vlgmr.msra.gmra.mxu1 %vm1856_vm2, %v3141_v44  ;;  %v4127_v44 = vld [vmem:[%s5577_s1 + $0x3] ss:$0 sm:$0xff] }
 0x4fc   :  { %4693 = vmatmul.mubr.msk.f32.vlgmr.msra.gmra.mxu0 %vm1856_vm2, %v3068_v45  ;;  %v4659_v48 = vpop.f32.mrf.mxu1 }
 0x4fd   :  { %v4654_v49 = vpop.f32.mrf.mxu0  ;;  %4701 = vmatpush3.msra.mxu0 %v3800_v28 }
 0x4fe   :  { %4702 = vmatprep.subr.mxu0 %v3799_v29 }
 0x4ff   :  { %4703 = vmatpush3.msra.mxu0 %v3799_v29 }
 0x500   :  { %4704 = vmatprep.subr.mxu0 %v3798_v30 }
 0x501   :  { %4705 = vmatpush3.msra.mxu0 %v3798_v30 }
 0x502   :  { %4706 = vmatprep.subr.mxu0 %v3797_v31 }
 0x503   :  { %4707 = vmatpush3.msra.mxu0 %v3797_v31 }
 0x59d   :  { %v3222_v50 = vpop.f32.mrf.mxu0 }
 0x59e   :  { %v3737_v55 = vsel %vm32_vm0, %v3222_v50, 0.0 }
 0x59f   :  { %v4664_v51 = vpop.f32.mrf.mxu0 }
 0x5a1   :  { %v3295_v52 = vpop.f32.mrf.mxu1 }
 0x5a2   :  { %v3738_v53 = vsel %vm32_vm0, %v3295_v52, 0.0 }
 0x5a3   :  { %v4669_v34 = vpop.f32.mrf.mxu1  ;;  %v3739_v57 = vadd.f32 %v3738_v53, %v3737_v55  ;;  %v4134_v55 = vld [vmem:[%s5580_s4 + $0x38] sm:$0xff] }
 0x5a4   :  { %4711 = vmatprep.subr.mxu1 %v4134_v55 }
 0x5a5   :  { %4712 = vmatpush3.xpose.msra.mxu1 %v4134_v55 }
 0x5a7   :  { %v3441_v56 = vpop.f32.mrf.mxu1 }
 0x5a8   :  { %v3368_v58 = vpop.f32.mrf.mxu0  ;;  %v3742_v63 = vsel %vm32_vm0, %v3441_v56, 0.0  ;;  %v4133_v56 = vld [vmem:[%s5580_s4 + $0x30] sm:$0xff] }
 0x5a9   :  { %v3740_v14 = vsel %vm32_vm0, %v3368_v58, 0.0  ;;  %v4679_v59 = vpop.f32.mrf.mxu1  ;;  %4713 = vmatprep.subr.mxu1 %v4133_v56  ;;  %v4131_v58 = vld [vmem:[%s5580_s4 + $0x20] sm:$0xff] }
 0x5aa   :  { %v3741_v60 = vadd.f32 %v3740_v14, %v3739_v57  ;;  %v4674_v61 = vpop.f32.mrf.mxu0  ;;  %v4132_v57 = vld [vmem:[%s5580_s4 + $0x28] sm:$0xff]  ;;  %4714 = vmatpush3.xpose.msra.mxu1 %v4133_v56  ;;  %v4128_v14 = vld [vmem:[%s5581_s5] ss:$0 sm:$0xff] }
 0x5ab   :  { %4715 = vmatprep.subr.mxu1 %v4132_v57 }
 0x5ac   :  { %v3743_v0 = vadd.f32 %v3742_v63, %v3741_v60 }
 0x5ae   :  { %v3755_v1 = vadd.f32 %v4125_v62, %v3743_v0  ;;  %4716 = vmatpush3.xpose.msra.mxu1 %v4132_v57 }
 0x5af   :  { %4717 = vmatprep.subr.mxu1 %v4131_v58 }
 0x5b0   :  { %v5512_v3 = vadd.f32 %v4771_v2, %v3755_v1 }
 0x5b1   :  { %v3587_v4 = vpop.f32.mrf.mxu1 }
 0x5b2   :  { %v3514_v5 = vpop.f32.mrf.mxu0  ;;  %v3759_v6 = vsel %vm32_vm0, %v5512_v3, 0.0  ;;  %v3745_v54 = vsel %vm32_vm0, %v3587_v4, 0.0  ;;  %4718 = vmatpush3.xpose.msra.mxu1 %v4131_v58 }
 0x5b3   :  { %v4689_v7 = vpop.f32.mrf.mxu1  ;;  %3760 = vadd.xlane.f32.xlu0 %v3759_v6  ;;  %v3744_v9 = vsel %vm32_vm0, %v3514_v5, 0.0 }
 0x5b4   :  { %v4684_v8 = vpop.f32.mrf.mxu0  ;;  %v3746_v10 = vadd.f32 %v3745_v54, %v3744_v9  ;;  %v4135_v54 = vld [vmem:[%s5577_s1 + $0x5] ss:$0 sm:$0xff] }
 0x5bb   :  { %v3733_v38 = vpop.f32.mrf.mxu1 }
 0x5bc   :  { %v3660_v11 = vpop.f32.mrf.mxu0  ;;  %v3749_v16 = vsel %vm32_vm0, %v3733_v38, 0.0 }
 0x5bd   :  { %v3747_v12 = vsel %vm32_vm0, %v3660_v11, 0.0  ;;  %v4699_v39 = vpop.f32.mrf.mxu1 }
 0x5be   :  { %v3748_v13 = vadd.f32 %v3747_v12, %v3746_v10  ;;  %v4694_v15 = vpop.f32.mrf.mxu0 }
 0x5c0   :  { %v3750_v17 = vadd.f32 %v3749_v16, %v3748_v13 }
 0x5c2   :  { %v3756_v43 = vadd.f32 %v4125_v62, %v3750_v17 }
 0x5c4   :  { %v5523_v18 = vadd.f32 %v4772_v42, %v3756_v43 }
 0x5c6   :  { %v3762_v19 = vsel %vm32_vm0, %v5523_v18, 0.0 }
 0x5c7   :  { %3763 = vadd.xlane.f32.xlu1 %v3762_v19 }
 0x63c   :  { %v3761_v20 = vpop.xlane.xlu0 %3760 }
 0x63d   :  { %v3765_v46 = vmul.f32 0.03125, %v3761_v20 }
 0x63f   :  { %v3767_v47 = vsub.f32 %v5512_v3, %v3765_v46 }
 0x641   :  { %v3769_v21 = vmul.f32 %v3767_v47, %v3767_v47 }
 0x643   :  { %v3771_v22 = vsel %vm32_vm0, %v3769_v21, 0.0 }
 0x644   :  { %3772 = vadd.xlane.f32.xlu0 %v3771_v22 }
 0x650   :  { %v3764_v23 = vpop.xlane.xlu1 %3763 }
 0x651   :  { %v3766_v24 = vmul.f32 0.03125, %v3764_v23 }
 0x653   :  { %v3768_v25 = vsub.f32 %v5523_v18, %v3766_v24 }
 0x655   :  { %v3770_v26 = vmul.f32 %v3768_v25, %v3768_v25 }
 0x657   :  { %v3774_v27 = vsel %vm32_vm0, %v3770_v26, 0.0 }
 0x658   :  { %3775 = vadd.xlane.f32.xlu1 %v3774_v27 }
 0x6cd   :  { %v3773_v32 = vpop.xlane.xlu0 %3772 }
 0x6ce   :  { %v3777_v33 = vmul.f32 0.03125, %v3773_v32 }
 0x6d0   :  { %v3779_v35 = vadd.f32 1e-05, %v3777_v33 }
 0x6d2   :  { %4763 = vrsqrt.f32 %v3779_v35 }
 0x6df   :  { %v4764_v36 = vpop.eup %4763 }
 0x6e0   :  { %v3783_v40 = vmul.f32 %v4764_v36, %v3767_v47 }
 0x6e1   :  { %v3776_v41 = vpop.xlane.xlu1 %3775 }
 0x6e2   :  { %v3778_v45 = vmul.f32 0.03125, %v3776_v41  ;;  %v3789_v48 = vmul.f32 %v4126_v37, %v3783_v40 }
 0x6e4   :  { %v3780_v49 = vadd.f32 1e-05, %v3778_v45  ;;  %v3795_v50 = vadd.f32 %v4127_v44, %v3789_v48 }
 0x6e6   :  { %4765 = vrsqrt.f32 %v3780_v49  ;;  %4708 = vmatprep.mubr.msk.f32.mxu0 %vm32_vm0, %v3795_v50 }
 0x6f3   :  { %v4766_v51 = vpop.eup %4765 }
 0x6f4   :  { %v3784_v52 = vmul.f32 %v4766_v51, %v3768_v25 }
 0x6f6   :  { %v3790_v34 = vmul.f32 %v4126_v37, %v3784_v52 }
 0x6f8   :  { %v3796_v53 = vadd.f32 %v4127_v44, %v3790_v34 }
 0x6fa   :  { %4709 = vmatmul.mubr.msk.f32.vlgmr.msra.gmra.mxu0 %vm32_vm0, %v3796_v53 }
 0x7ba   :  { %v4710_v59 = vpop.f32.mrf.mxu0 }
 0x7bb   :  { %v3886_v60 = vadd.f32 %v4710_v59, %v4128_v14 }
 0x7bc   :  { %v3880_v61 = vpop.f32.mrf.mxu0 }
 0x7bd   :  { %v3892_v62 = vmul.f32 0.70710677, %v3886_v60  ;;  %v3881_v63 = vadd.f32 %v4128_v14, %v3880_v61  ;;  %v3890_v7 = vmul.f32 0.5, %v3886_v60 }
 0x7bf   :  { %4767 = verf.f32 %v3892_v62  ;;  %v3891_v0 = vmul.f32 0.70710677, %v3881_v63  ;;  %v3889_v5 = vmul.f32 0.5, %v3881_v63 }
 0x7c1   :  { %4769 = verf.f32 %v3891_v0 }
 0x7cc   :  { %v4768_v1 = vpop.eup %4767 }
 0x7cd   :  { %v3896_v4 = vadd.f32 1.0, %v4768_v1 }
 0x7ce   :  { %v4770_v2 = vpop.eup %4769 }
 0x7cf   :  { %v3895_v6 = vadd.f32 1.0, %v4770_v2  ;;  %v3898_v9 = vmul.f32 %v3896_v4, %v3890_v7 }
 0x7d1   :  { %v3897_v8 = vmul.f32 %v3895_v6, %v3889_v5 }
 0x7d3   :  { %4719 = vmatprep.mubr.f32.mxu1 %v3897_v8 }
 0x7d4   :  { %4720 = vmatmul.mubr.f32.vlgmr.msra.gmra.mxu1 %v3898_v9 }
 0x894   :  { %v4721_v38 = vpop.f32.mrf.mxu1 }
 0x895   :  { %v3980_v10 = vadd.f32 %v4721_v38, %v4135_v54 }
 0x896   :  { %v3974_v11 = vpop.f32.mrf.mxu1 }
 0x897   :  { %v3984_v12 = vadd.f32 %v3980_v10, %v5523_v18  ;;  %v3975_v39 = vadd.f32 %v4135_v54, %v3974_v11 }
 0x899   :  { %3986 = vst.msk [vmem:[#allocation2 + $0x8] sm:$0xff] %vm32_vm0, %v3984_v12  ;;  %v3983_v13 = vadd.f32 %v3975_v39, %v5512_v3 }
 0x89b   :  { %3985 = vst.msk [vmem:[#allocation2] sm:$0xff] %vm32_vm0, %v3983_v13 }
 0x89c   :  { %4784 = shalt.err (!%p4781_p4)
}
 0x89d   :  { %s4798_s1 = smov 128   ;;  %s4799_s23 = smov 8  }
 0x89e   :  { %3998 = dma.vmem_to_hbm [thread:$0]  %s3993_s21, 256, %s5582_s6, [#allocation3], %s4798_s1, %s4798_s1, %s4799_s23  }
 0x89f   :  { %4793 = dma.done.wait [#allocation3], 256  }
 0x8a0   :  { %4794 = vsyncadd [#allocation3], 4294967040 }
 0x8a1   :  { %4002 = vsyncpa [#allocation3], 1 }

</bundles_post_ra>
